<compile_context>
chip_gen: v7x
topology: tpu7x:2x2x1
jax: 0.10.0
libtpu: 0.0.40
codegen_flags: <defaults>
</compile_context>

<pallas_src>
import functools
import math

import jax
import jax.numpy as jnp
from jax.experimental import pallas as pl
from jax.experimental.pallas import tpu as pltpu


# ----------------------------------------------------------------------------
# Config (small synthetic sizes, consistent with MiniCPM-style hf_config)
# ----------------------------------------------------------------------------
CFG = dict(
    vocab_size=128,
    hidden_size=64,
    intermediate_size=128,
    num_attention_heads=4,
    num_key_value_heads=2,
    num_hidden_layers=2,
    rms_norm_eps=1e-6,
    rope_theta=10000.0,
    max_position_embeddings=8192,
    scale_emb=12.0,
    scale_depth=1.4,
    mup_denominator=4.0,
    dim_model_base=32.0,
    hidden_act="silu",
)
CFG["head_dim"] = CFG["hidden_size"] // CFG["num_attention_heads"]


# ----------------------------------------------------------------------------
# In-kernel helpers (traced inside the Pallas kernel)
# ----------------------------------------------------------------------------
def _rms(x, w, eps):
    # x: [T, H] f32, w: [1, H] f32
    var = jnp.mean(x * x, axis=-1, keepdims=True)
    return x * jax.lax.rsqrt(var + eps) * w


# ----------------------------------------------------------------------------
# The single fused kernel: preamble (step 0) + one decoder layer per grid step
# ----------------------------------------------------------------------------
def _eagle_fused_kernel(emb_ref, hid_ref, n1_ref, n2_ref, fc_ref,
                        cos_ref, sin_ref,
                        ln1_ref, qw_ref, kw_ref, vw_ref, ow_ref,
                        ln2_ref, gw_ref, uw_ref, dw_ref,
                        o_ref, h_ref,
                        *, eps, scale_emb, depth_scale, attn_scale,
                        num_heads, num_kv_heads, head_dim, out_scale):
    layer = pl.program_id(0)
    T = h_ref.shape[0]
    H = h_ref.shape[1]
    half = head_dim // 2
    group = num_heads // num_kv_heads

    # ----------------- preamble: only on the first grid step -----------------
    @pl.when(layer == 0)
    def _():
        e = emb_ref[...].astype(jnp.float32) * scale_emb     # order per torch ref
        hs = hid_ref[...].astype(jnp.float32)
        e = _rms(e, n1_ref[...].astype(jnp.float32), eps)
        hs = _rms(hs, n2_ref[...].astype(jnp.float32), eps)
        # lane-concat -> [T, 2H] (=128 lanes): one MXU-native K=2H matmul
        eh = jnp.concatenate([e, hs], axis=-1).astype(jnp.bfloat16)
        h_ref[...] = jnp.dot(eh, fc_ref[...],
                             preferred_element_type=jnp.float32)

    h = h_ref[...]                       # residual stream, f32, resident in VMEM
    cosf = cos_ref[...]                  # [T, Dh] full-width cos
    sinf = sin_ref[...]                  # [T, Dh] sign-folded sin (rotate-half)

    # ----------------------------- attention --------------------------------
    x = _rms(h, ln1_ref[0].astype(jnp.float32), eps)
    xb = x.astype(jnp.bfloat16)                                   # [T, H]

    # batched per-head projections: no lane-width-16 slices, no transposes
    xq = jnp.broadcast_to(xb[None], (num_heads, T, H))
    xkv = jnp.broadcast_to(xb[None], (num_kv_heads, T, H))
    dn_proj = (((2,), (1,)), ((0,), (0,)))
    q = jax.lax.dot_general(xq, qw_ref[0], dn_proj,
                            preferred_element_type=jnp.float32)   # [nh, T, Dh]
    k = jax.lax.dot_general(xkv, kw_ref[0], dn_proj,
                            preferred_element_type=jnp.float32)   # [nkv, T, Dh]
    v = jax.lax.dot_general(xkv, vw_ref[0], dn_proj,
                            preferred_element_type=jnp.float32)   # [nkv, T, Dh]

    # neox RoPE via roll + sign-folded sin (no slice/concat)
    def rope(t):
        return t * cosf[None] + pltpu.roll(t, shift=half, axis=2) * sinf[None]

    q = rope(q) * attn_scale
    k = rope(k)

    # GQA: expand kv heads to query heads
    if group > 1:
        k = jnp.broadcast_to(k[:, None], (num_kv_heads, group, T, head_dim))
        k = k.reshape(num_heads, T, head_dim)
        v = jnp.broadcast_to(v[:, None], (num_kv_heads, group, T, head_dim))
        v = v.reshape(num_heads, T, head_dim)

    qb = q.astype(jnp.bfloat16)
    kb = k.astype(jnp.bfloat16)
    vb = v.astype(jnp.bfloat16)

    # scores: contract head_dim directly (no explicit transpose of K)
    scores = jax.lax.dot_general(qb, kb, (((2,), (2,)), ((0,), (0,))),
                                 preferred_element_type=jnp.float32)  # [nh,T,T]
    row = jax.lax.broadcasted_iota(jnp.int32, (num_heads, T, T), 1)
    col = jax.lax.broadcasted_iota(jnp.int32, (num_heads, T, T), 2)
    scores = jnp.where(row >= col, scores, -1e30)
    m = jnp.max(scores, axis=-1, keepdims=True)
    p = jnp.exp(scores - m)
    p = p / jnp.sum(p, axis=-1, keepdims=True)        # exact softmax division

    attn = jax.lax.dot_general(p.astype(jnp.bfloat16), vb,
                               (((2,), (1,)), ((0,), (0,))),
                               preferred_element_type=jnp.float32)  # [nh,T,Dh]
    # o_proj as per-head matmul + sum over heads (== concat-heads @ o_w)
    o_heads = jax.lax.dot_general(attn.astype(jnp.bfloat16), ow_ref[0],
                                  (((2,), (1,)), ((0,), (0,))),
                                  preferred_element_type=jnp.float32)  # [nh,T,H]
    a_out = jnp.sum(o_heads, axis=0)                                   # [T, H]
    h = h + a_out * depth_scale

    # -------------------------------- MLP -----------------------------------
    x = _rms(h, ln2_ref[0].astype(jnp.float32), eps)
    xb = x.astype(jnp.bfloat16)
    gate = jnp.dot(xb, gw_ref[0], preferred_element_type=jnp.float32)   # [T, I]
    up = jnp.dot(xb, uw_ref[0], preferred_element_type=jnp.float32)     # [T, I]
    act = (jax.nn.silu(gate) * up).astype(jnp.bfloat16)
    mlp = jnp.dot(act, dw_ref[0], preferred_element_type=jnp.float32)   # [T, H]
    h = h + mlp * depth_scale

    h_ref[...] = h                      # residual stays resident in VMEM scratch

    # single store + /scale_width, fused into the last layer only
    @pl.when(layer == pl.num_programs(0) - 1)
    def _():
        o_ref[...] = h * out_scale


def eagle_fused_call(embeds, hidden, params, cos_full, sin_signed, cfg,
                     out_scale):
    T, H = embeds.shape
    nh = cfg["num_attention_heads"]
    nkv = cfg["num_key_value_heads"]
    Dh = cfg["head_dim"]
    I = cfg["intermediate_size"]
    L = cfg["num_hidden_layers"]
    depth_scale = cfg["scale_depth"] / math.sqrt(cfg["mup_denominator"])

    def const_spec(shape):
        n = len(shape)
        return pl.BlockSpec(shape, lambda l, n=n: (0,) * n)

    def layer_spec(shape):
        n = len(shape)
        return pl.BlockSpec(shape, lambda l, n=n: (l,) + (0,) * (n - 1))

    kern = functools.partial(
        _eagle_fused_kernel,
        eps=cfg["rms_norm_eps"],
        scale_emb=cfg["scale_emb"],
        depth_scale=depth_scale,
        attn_scale=Dh ** (-0.5),
        num_heads=nh,
        num_kv_heads=nkv,
        head_dim=Dh,
        out_scale=out_scale,
    )

    return pl.pallas_call(
        kern,
        out_shape=jax.ShapeDtypeStruct((T, H), jnp.float32),
        grid=(L,),
        in_specs=[
            const_spec((T, H)),              # embeds
            const_spec((T, H)),              # hidden_states
            const_spec((1, H)),              # input_norm1
            const_spec((1, H)),              # input_norm2
            const_spec((2 * H, H)),          # fc weight [2H, H]
            const_spec((T, Dh)),             # cos (full width)
            const_spec((T, Dh)),             # sin (sign-folded)
            layer_spec((1, 1, H)),           # input_layernorm
            layer_spec((1, nh, H, Dh)),      # q_w
            layer_spec((1, nkv, H, Dh)),     # k_w
            layer_spec((1, nkv, H, Dh)),     # v_w
            layer_spec((1, nh, Dh, H)),      # o_w
            layer_spec((1, 1, H)),           # post_attention_layernorm
            layer_spec((1, H, I)),           # gate_w
            layer_spec((1, H, I)),           # up_w
            layer_spec((1, I, H)),           # down_w
        ],
        out_specs=const_spec((T, H)),
        scratch_shapes=[pltpu.VMEM((T, H), jnp.float32)],   # residual stream
        compiler_params=pltpu.CompilerParams(
            dimension_semantics=("arbitrary",)),
    )(embeds, hidden,
      params["input_norm1"], params["input_norm2"], params["fc_w"],
      cos_full, sin_signed,
      params["ln1"], params["q_w"], params["k_w"], params["v_w"],
      params["o_w"], params["ln2"], params["gate_w"], params["up_w"],
      params["down_w"])


# ----------------------------------------------------------------------------
# Parameter init (deterministic, synthetic).  Matmul weights stored bf16,
# pre-transposed [in, out]; per-layer weights pre-stacked on a leading L axis;
# q/k/v/o additionally stored per-head for the batched-head attention path.
# ----------------------------------------------------------------------------
def init_params(key, cfg):
    H = cfg["hidden_size"]
    I = cfg["intermediate_size"]
    V = cfg["vocab_size"]
    nh = cfg["num_attention_heads"]
    nkv = cfg["num_key_value_heads"]
    Dh = cfg["head_dim"]
    L = cfg["num_hidden_layers"]

    def nrm_bf16(k, shape, std=0.02):
        return (std * jax.random.normal(k, shape, dtype=jnp.float32)).astype(
            jnp.bfloat16)

    keys = jax.random.split(key, 9)
    return {
        "embed": 0.02 * jax.random.normal(keys[0], (V, H), dtype=jnp.float32),
        "input_norm1": jnp.ones((1, H), jnp.float32),
        "input_norm2": jnp.ones((1, H), jnp.float32),
        # torch fc: Linear(2H -> H); stored pre-transposed [2H, H]
        # (first H rows act on embeds, last H rows on hidden_states).
        "fc_w": nrm_bf16(keys[1], (2 * H, H)),
        "ln1": jnp.ones((L, 1, H), jnp.float32),
        "ln2": jnp.ones((L, 1, H), jnp.float32),
        "q_w": nrm_bf16(keys[2], (L, nh, H, Dh)),
        "k_w": nrm_bf16(keys[3], (L, nkv, H, Dh)),
        "v_w": nrm_bf16(keys[4], (L, nkv, H, Dh)),
        "o_w": nrm_bf16(keys[5], (L, nh, Dh, H)),
        "gate_w": nrm_bf16(keys[6], (L, H, I)),
        "up_w": nrm_bf16(keys[7], (L, H, I)),
        "down_w": nrm_bf16(keys[8], (L, I, H)),
    }


# ----------------------------------------------------------------------------
# Model forward (EagleMiniCPMForCausalLM.forward semantics)
# ----------------------------------------------------------------------------
def eagle_minicpm_forward(params, input_ids, positions, hidden_states, cfg):
    H = cfg["hidden_size"]
    Dh = cfg["head_dim"]
    half = Dh // 2
    scale_width = H / cfg["dim_model_base"]

    # RoPE tables computed once (full-width, sign-folded for roll-based
    # rotate-half) and shared by every layer.
    inv_freq = 1.0 / (cfg["rope_theta"] **
                      (jnp.arange(half, dtype=jnp.float32) / half))
    freqs = positions.astype(jnp.float32)[:, None] * inv_freq[None, :]
    cos_h = jnp.cos(freqs)                                   # [T, half]
    sin_h = jnp.sin(freqs)                                   # [T, half]
    cos_full = jnp.concatenate([cos_h, cos_h], axis=-1)      # [T, Dh]
    sin_signed = jnp.concatenate([-sin_h, sin_h], axis=-1)   # [T, Dh]

    # TODO(synk): embedding lookup kept as an XLA gather (HBM table lookup is
    # not a natural Pallas block-access pattern at real vocab sizes).
    input_embeds = params["embed"][input_ids]

    # One fused pallas_call: preamble + all decoder layers + /scale_width.
    h = eagle_fused_call(input_embeds, hidden_states.astype(jnp.float32),
                         params, cos_full, sin_signed, cfg,
                         out_scale=1.0 / scale_width)

    # EagleMiniCPMModel returns hidden_states twice (no final self.norm);
    # the outer forward's /scale_width is already folded into the kernel.
    return h, h


# ----------------------------------------------------------------------------
# Main
# ----------------------------------------------------------------------------
if __name__ == "__main__":
    key = jax.random.PRNGKey(0)
    k_params, k_ids, k_hidden = jax.random.split(key, 3)

    T = 8  # number of tokens (flattened batch, as in vLLM)
    params = init_params(k_params, CFG)

    input_ids = jax.random.randint(k_ids, (T,), 0, CFG["vocab_size"],
                                   dtype=jnp.int32)
    positions = jnp.arange(T, dtype=jnp.int32)
    hidden_states = jax.random.normal(k_hidden, (T, CFG["hidden_size"]),
                                      dtype=jnp.float32)

    fwd = jax.jit(functools.partial(eagle_minicpm_forward, cfg=CFG))
    h1, h2 = fwd(params, input_ids, positions, hidden_states)
    jax.block_until_ready((h1, h2))

    assert h1.shape == (T, CFG["hidden_size"])
    assert h2.shape == (T, CFG["hidden_size"])
    assert jnp.all(jnp.isfinite(h1))
    assert jnp.all(jnp.isfinite(h2))
    print("KERNEL_OK")
</pallas_src>

<mosaic_0001>
module attributes {stable_mosaic.version = 11 : i64} {
  func.func @_eagle_fused_kernel(%arg0: i32, %arg1: memref<8x64xf32, #tpu.memory_space<vmem>>, %arg2: memref<8x64xf32, #tpu.memory_space<vmem>>, %arg3: memref<1x64xf32, #tpu.memory_space<vmem>>, %arg4: memref<1x64xf32, #tpu.memory_space<vmem>>, %arg5: memref<128x64xbf16, #tpu.memory_space<vmem>>, %arg6: memref<8x16xf32, #tpu.memory_space<vmem>>, %arg7: memref<8x16xf32, #tpu.memory_space<vmem>>, %arg8: memref<1x1x64xf32, #tpu.memory_space<vmem>>, %arg9: memref<1x4x64x16xbf16, #tpu.memory_space<vmem>>, %arg10: memref<1x2x64x16xbf16, #tpu.memory_space<vmem>>, %arg11: memref<1x2x64x16xbf16, #tpu.memory_space<vmem>>, %arg12: memref<1x4x16x64xbf16, #tpu.memory_space<vmem>>, %arg13: memref<1x1x64xf32, #tpu.memory_space<vmem>>, %arg14: memref<1x64x128xbf16, #tpu.memory_space<vmem>>, %arg15: memref<1x64x128xbf16, #tpu.memory_space<vmem>>, %arg16: memref<1x128x64xbf16, #tpu.memory_space<vmem>>, %arg17: memref<8x64xf32, #tpu.memory_space<vmem>>, %arg18: memref<8x64xf32, #tpu.memory_space<vmem>>) attributes {dimension_semantics = [#tpu.dimension_semantics<arbitrary>], iteration_bounds = array<i64: 2>, scalar_prefetch = 0 : i64, scratch_operands = 1 : i64, tpu.core_type = #tpu.core_type<tc>, window_params = [{pipeline_mode = #tpu.pipeline_mode<synchronous>, transform_indices = @transform_0, window_bounds = array<i64: 8, 64>}, {pipeline_mode = #tpu.pipeline_mode<synchronous>, transform_indices = @transform_1, window_bounds = array<i64: 8, 64>}, {pipeline_mode = #tpu.pipeline_mode<synchronous>, transform_indices = @transform_2, window_bounds = array<i64: 1, 64>}, {pipeline_mode = #tpu.pipeline_mode<synchronous>, transform_indices = @transform_3, window_bounds = array<i64: 1, 64>}, {pipeline_mode = #tpu.pipeline_mode<synchronous>, transform_indices = @transform_4, window_bounds = array<i64: 128, 64>}, {pipeline_mode = #tpu.pipeline_mode<synchronous>, transform_indices = @transform_5, window_bounds = array<i64: 8, 16>}, {pipeline_mode = #tpu.pipeline_mode<synchronous>, transform_indices = @transform_6, window_bounds = array<i64: 8, 16>}, {transform_indices = @transform_7, window_bounds = array<i64: 1, 1, 64>}, {transform_indices = @transform_8, window_bounds = array<i64: 1, 4, 64, 16>}, {transform_indices = @transform_9, window_bounds = array<i64: 1, 2, 64, 16>}, {transform_indices = @transform_10, window_bounds = array<i64: 1, 2, 64, 16>}, {transform_indices = @transform_11, window_bounds = array<i64: 1, 4, 16, 64>}, {transform_indices = @transform_12, window_bounds = array<i64: 1, 1, 64>}, {transform_indices = @transform_13, window_bounds = array<i64: 1, 64, 128>}, {transform_indices = @transform_14, window_bounds = array<i64: 1, 64, 128>}, {transform_indices = @transform_15, window_bounds = array<i64: 1, 128, 64>}, {pipeline_mode = #tpu.pipeline_mode<synchronous>, transform_indices = @transform_16, window_bounds = array<i64: 8, 64>}]} {
    %c0_i32 = arith.constant 0 : i32
    %0 = arith.cmpi eq, %arg0, %c0_i32 : i32
    %1 = arith.extui %0 : i1 to i32
    %c0_i32_0 = arith.constant 0 : i32
    %2 = arith.cmpi ne, %1, %c0_i32_0 : i32
    scf.if %2 {
      %c0_63 = arith.constant 0 : index
      %c0_64 = arith.constant 0 : index
      %129 = vector.load %arg1[%c0_63, %c0_64] : memref<8x64xf32, #tpu.memory_space<vmem>>, vector<8x64xf32>
      %cst_65 = arith.constant 1.200000e+01 : f32
      %130 = vector.broadcast %cst_65 : f32 to vector<8x64xf32>
      %131 = arith.mulf %129, %130 : vector<8x64xf32>
      %c0_66 = arith.constant 0 : index
      %c0_67 = arith.constant 0 : index
      %132 = vector.load %arg2[%c0_66, %c0_67] : memref<8x64xf32, #tpu.memory_space<vmem>>, vector<8x64xf32>
      %c0_68 = arith.constant 0 : index
      %c0_69 = arith.constant 0 : index
      %133 = vector.load %arg3[%c0_68, %c0_69] : memref<1x64xf32, #tpu.memory_space<vmem>>, vector<1x64xf32>
      %134 = arith.mulf %131, %131 : vector<8x64xf32>
      %cst_70 = arith.constant dense<0.000000e+00> : vector<8xf32>
      %135 = vector.multi_reduction <add>, %134, %cst_70 [1] : vector<8x64xf32> to vector<8xf32>
      %136 = vector.shape_cast %135 : vector<8xf32> to vector<8x1xf32>
      %cst_71 = arith.constant 6.400000e+01 : f32
      %137 = vector.broadcast %cst_71 : f32 to vector<8x1xf32>
      %138 = arith.divf %136, %137 : vector<8x1xf32>
      %cst_72 = arith.constant 9.99999997E-7 : f32
      %139 = vector.broadcast %cst_72 : f32 to vector<8x1xf32>
      %140 = arith.addf %138, %139 : vector<8x1xf32>
      %141 = math.rsqrt %140 : vector<8x1xf32>
      %142 = vector.broadcast %141 : vector<8x1xf32> to vector<8x64xf32>
      %143 = arith.mulf %131, %142 : vector<8x64xf32>
      %144 = vector.broadcast %133 : vector<1x64xf32> to vector<8x64xf32>
      %145 = arith.mulf %143, %144 : vector<8x64xf32>
      %c0_73 = arith.constant 0 : index
      %c0_74 = arith.constant 0 : index
      %146 = vector.load %arg4[%c0_73, %c0_74] : memref<1x64xf32, #tpu.memory_space<vmem>>, vector<1x64xf32>
      %147 = arith.mulf %132, %132 : vector<8x64xf32>
      %cst_75 = arith.constant dense<0.000000e+00> : vector<8xf32>
      %148 = vector.multi_reduction <add>, %147, %cst_75 [1] : vector<8x64xf32> to vector<8xf32>
      %149 = vector.shape_cast %148 : vector<8xf32> to vector<8x1xf32>
      %cst_76 = arith.constant 6.400000e+01 : f32
      %150 = vector.broadcast %cst_76 : f32 to vector<8x1xf32>
      %151 = arith.divf %149, %150 : vector<8x1xf32>
      %cst_77 = arith.constant 9.99999997E-7 : f32
      %152 = vector.broadcast %cst_77 : f32 to vector<8x1xf32>
      %153 = arith.addf %151, %152 : vector<8x1xf32>
      %154 = math.rsqrt %153 : vector<8x1xf32>
      %155 = vector.broadcast %154 : vector<8x1xf32> to vector<8x64xf32>
      %156 = arith.mulf %132, %155 : vector<8x64xf32>
      %157 = vector.broadcast %146 : vector<1x64xf32> to vector<8x64xf32>
      %158 = arith.mulf %156, %157 : vector<8x64xf32>
      %159 = tpu.concatenate %145, %158 in 1 : vector<8x64xf32>, vector<8x64xf32> -> vector<8x128xf32>
      %160 = arith.truncf %159 : vector<8x128xf32> to vector<8x128xbf16>
      %c0_78 = arith.constant 0 : index
      %c0_79 = arith.constant 0 : index
      %161 = vector.load %arg5[%c0_78, %c0_79] : memref<128x64xbf16, #tpu.memory_space<vmem>>, vector<128x64xbf16>
      %cst_80 = arith.constant dense<0.000000e+00> : vector<8x64xf32>
      %162 = tpu.matmul %160, %161, %cst_80 {dimension_numbers = #tpu.dot_dimension_numbers<[1], [0], [0], [1], [0, 0, 1, 1], [], []>} : vector<8x128xbf16>, vector<128x64xbf16>, vector<8x64xf32> -> vector<8x64xf32>
      %c0_81 = arith.constant 0 : index
      %c0_82 = arith.constant 0 : index
      %163 = vector.load %arg18[%c0_81, %c0_82] : memref<8x64xf32, #tpu.memory_space<vmem>>, vector<8x64xf32>
      tpu.vector_store %arg18[%c0_81, %c0_82], %162 {strides = array<i32>} : memref<8x64xf32, #tpu.memory_space<vmem>>, vector<8x64xf32>,
    } else {
    }
    %c0 = arith.constant 0 : index
    %c0_1 = arith.constant 0 : index
    %3 = vector.load %arg18[%c0, %c0_1] : memref<8x64xf32, #tpu.memory_space<vmem>>, vector<8x64xf32>
    %c0_2 = arith.constant 0 : index
    %c0_3 = arith.constant 0 : index
    %4 = vector.load %arg6[%c0_2, %c0_3] : memref<8x16xf32, #tpu.memory_space<vmem>>, vector<8x16xf32>
    %c0_4 = arith.constant 0 : index
    %c0_5 = arith.constant 0 : index
    %5 = vector.load %arg7[%c0_4, %c0_5] : memref<8x16xf32, #tpu.memory_space<vmem>>, vector<8x16xf32>
    %c0_6 = arith.constant 0 : index
    %c0_7 = arith.constant 0 : index
    %c0_8 = arith.constant 0 : index
    %6 = vector.load %arg8[%c0_6, %c0_7, %c0_8] : memref<1x1x64xf32, #tpu.memory_space<vmem>>, vector<1x1x64xf32>
    %7 = vector.shape_cast %6 : vector<1x1x64xf32> to vector<1x64xf32>
    %8 = arith.mulf %3, %3 : vector<8x64xf32>
    %cst = arith.constant dense<0.000000e+00> : vector<8xf32>
    %9 = vector.multi_reduction <add>, %8, %cst [1] : vector<8x64xf32> to vector<8xf32>
    %10 = vector.shape_cast %9 : vector<8xf32> to vector<8x1xf32>
    %cst_9 = arith.constant 6.400000e+01 : f32
    %11 = vector.broadcast %cst_9 : f32 to vector<8x1xf32>
    %12 = arith.divf %10, %11 : vector<8x1xf32>
    %cst_10 = arith.constant 9.99999997E-7 : f32
    %13 = vector.broadcast %cst_10 : f32 to vector<8x1xf32>
    %14 = arith.addf %12, %13 : vector<8x1xf32>
    %15 = math.rsqrt %14 : vector<8x1xf32>
    %16 = vector.broadcast %15 : vector<8x1xf32> to vector<8x64xf32>
    %17 = arith.mulf %3, %16 : vector<8x64xf32>
    %18 = vector.broadcast %7 : vector<1x64xf32> to vector<8x64xf32>
    %19 = arith.mulf %17, %18 : vector<8x64xf32>
    %20 = arith.truncf %19 : vector<8x64xf32> to vector<8x64xbf16>
    %21 = vector.shape_cast %20 : vector<8x64xbf16> to vector<1x8x64xbf16>
    %22 = vector.shape_cast %21 : vector<1x8x64xbf16> to vector<1x8x64xbf16>
    %23 = vector.broadcast %22 : vector<1x8x64xbf16> to vector<4x8x64xbf16>
    %24 = vector.shape_cast %20 : vector<8x64xbf16> to vector<1x8x64xbf16>
    %25 = vector.shape_cast %24 : vector<1x8x64xbf16> to vector<1x8x64xbf16>
    %26 = vector.broadcast %25 : vector<1x8x64xbf16> to vector<2x8x64xbf16>
    %c0_11 = arith.constant 0 : index
    %c0_12 = arith.constant 0 : index
    %c0_13 = arith.constant 0 : index
    %c0_14 = arith.constant 0 : index
    %27 = vector.load %arg9[%c0_11, %c0_12, %c0_13, %c0_14] : memref<1x4x64x16xbf16, #tpu.memory_space<vmem>>, vector<1x4x64x16xbf16>
    %28 = vector.shape_cast %27 : vector<1x4x64x16xbf16> to vector<4x64x16xbf16>
    %cst_15 = arith.constant dense<0.000000e+00> : vector<4x8x16xf32>
    %29 = tpu.matmul %23, %28, %cst_15 {dimension_numbers = #tpu.dot_dimension_numbers<[2], [1], [1], [2], [0, 0, 0, 1, 1, 2], [0], [0]>} : vector<4x8x64xbf16>, vector<4x64x16xbf16>, vector<4x8x16xf32> -> vector<4x8x16xf32>
    %c0_16 = arith.constant 0 : index
    %c0_17 = arith.constant 0 : index
    %c0_18 = arith.constant 0 : index
    %c0_19 = arith.constant 0 : index
    %30 = vector.load %arg10[%c0_16, %c0_17, %c0_18, %c0_19] : memref<1x2x64x16xbf16, #tpu.memory_space<vmem>>, vector<1x2x64x16xbf16>
    %31 = vector.shape_cast %30 : vector<1x2x64x16xbf16> to vector<2x64x16xbf16>
    %cst_20 = arith.constant dense<0.000000e+00> : vector<2x8x16xf32>
    %32 = tpu.matmul %26, %31, %cst_20 {dimension_numbers = #tpu.dot_dimension_numbers<[2], [1], [1], [2], [0, 0, 0, 1, 1, 2], [0], [0]>} : vector<2x8x64xbf16>, vector<2x64x16xbf16>, vector<2x8x16xf32> -> vector<2x8x16xf32>
    %c0_21 = arith.constant 0 : index
    %c0_22 = arith.constant 0 : index
    %c0_23 = arith.constant 0 : index
    %c0_24 = arith.constant 0 : index
    %33 = vector.load %arg11[%c0_21, %c0_22, %c0_23, %c0_24] : memref<1x2x64x16xbf16, #tpu.memory_space<vmem>>, vector<1x2x64x16xbf16>
    %34 = vector.shape_cast %33 : vector<1x2x64x16xbf16> to vector<2x64x16xbf16>
    %cst_25 = arith.constant dense<0.000000e+00> : vector<2x8x16xf32>
    %35 = tpu.matmul %26, %34, %cst_25 {dimension_numbers = #tpu.dot_dimension_numbers<[2], [1], [1], [2], [0, 0, 0, 1, 1, 2], [0], [0]>} : vector<2x8x64xbf16>, vector<2x64x16xbf16>, vector<2x8x16xf32> -> vector<2x8x16xf32>
    %36 = vector.shape_cast %4 : vector<8x16xf32> to vector<1x8x16xf32>
    %37 = vector.broadcast %36 : vector<1x8x16xf32> to vector<4x8x16xf32>
    %38 = arith.mulf %29, %37 : vector<4x8x16xf32>
    %c8_i32 = arith.constant 8 : i32
    %39 = tpu.dynamic_rotate %29 by %c8_i32 dim 2 : vector<4x8x16xf32>, i32 -> vector<4x8x16xf32>
    %40 = vector.shape_cast %5 : vector<8x16xf32> to vector<1x8x16xf32>
    %41 = vector.broadcast %40 : vector<1x8x16xf32> to vector<4x8x16xf32>
    %42 = arith.mulf %39, %41 : vector<4x8x16xf32>
    %43 = arith.addf %38, %42 : vector<4x8x16xf32>
    %cst_26 = arith.constant 2.500000e-01 : f32
    %44 = vector.broadcast %cst_26 : f32 to vector<4x8x16xf32>
    %45 = arith.mulf %43, %44 : vector<4x8x16xf32>
    %46 = vector.shape_cast %4 : vector<8x16xf32> to vector<1x8x16xf32>
    %47 = vector.broadcast %46 : vector<1x8x16xf32> to vector<2x8x16xf32>
    %48 = arith.mulf %32, %47 : vector<2x8x16xf32>
    %c8_i32_27 = arith.constant 8 : i32
    %49 = tpu.dynamic_rotate %32 by %c8_i32_27 dim 2 : vector<2x8x16xf32>, i32 -> vector<2x8x16xf32>
    %50 = vector.shape_cast %5 : vector<8x16xf32> to vector<1x8x16xf32>
    %51 = vector.broadcast %50 : vector<1x8x16xf32> to vector<2x8x16xf32>
    %52 = arith.mulf %49, %51 : vector<2x8x16xf32>
    %53 = arith.addf %48, %52 : vector<2x8x16xf32>
    %54 = vector.shape_cast %53 : vector<2x8x16xf32> to vector<2x1x8x16xf32>
    %55 = vector.shape_cast %54 : vector<2x1x8x16xf32> to vector<2x1x8x16xf32>
    %56 = vector.broadcast %55 : vector<2x1x8x16xf32> to vector<2x2x8x16xf32>
    %57 = vector.shape_cast %56 : vector<2x2x8x16xf32> to vector<4x8x16xf32>
    %58 = vector.shape_cast %35 : vector<2x8x16xf32> to vector<2x1x8x16xf32>
    %59 = vector.shape_cast %58 : vector<2x1x8x16xf32> to vector<2x1x8x16xf32>
    %60 = vector.broadcast %59 : vector<2x1x8x16xf32> to vector<2x2x8x16xf32>
    %61 = vector.shape_cast %60 : vector<2x2x8x16xf32> to vector<4x8x16xf32>
    %62 = arith.truncf %45 : vector<4x8x16xf32> to vector<4x8x16xbf16>
    %63 = arith.truncf %57 : vector<4x8x16xf32> to vector<4x8x16xbf16>
    %64 = arith.truncf %61 : vector<4x8x16xf32> to vector<4x8x16xbf16>
    %cst_28 = arith.constant dense<0.000000e+00> : vector<4x8x8xf32>
    %65 = tpu.matmul %62, %63, %cst_28 {dimension_numbers = #tpu.dot_dimension_numbers<[2], [2], [1], [1], [0, 0, 0, 1, 1, 1], [0], [0]>} : vector<4x8x16xbf16>, vector<4x8x16xbf16>, vector<4x8x8xf32> -> vector<4x8x8xf32>
    %66 = tpu.iota {dimensions = array<i32: 1>} : vector<4x8x8xi32>
    %67 = tpu.iota {dimensions = array<i32: 2>} : vector<4x8x8xi32>
    %68 = arith.cmpi sge, %66, %67 : vector<4x8x8xi32>
    %cst_29 = arith.constant -1.000000e+30 : f32
    %69 = vector.broadcast %cst_29 : f32 to vector<4x8x8xf32>
    %70 = arith.select %68, %65, %69 : vector<4x8x8xi1>, vector<4x8x8xf32>
    %cst_30 = arith.constant dense<0xFF800000> : vector<4x8xf32>
    %71 = vector.multi_reduction <maximumf>, %70, %cst_30 [2] : vector<4x8x8xf32> to vector<4x8xf32>
    %72 = vector.shape_cast %71 : vector<4x8xf32> to vector<4x8x1xf32>
    %73 = vector.broadcast %72 : vector<4x8x1xf32> to vector<4x8x8xf32>
    %74 = arith.subf %70, %73 : vector<4x8x8xf32>
    %75 = math.exp %74 : vector<4x8x8xf32>
    %cst_31 = arith.constant dense<0.000000e+00> : vector<4x8xf32>
    %76 = vector.multi_reduction <add>, %75, %cst_31 [2] : vector<4x8x8xf32> to vector<4x8xf32>
    %77 = vector.shape_cast %76 : vector<4x8xf32> to vector<4x8x1xf32>
    %78 = vector.broadcast %77 : vector<4x8x1xf32> to vector<4x8x8xf32>
    %79 = arith.divf %75, %78 : vector<4x8x8xf32>
    %80 = arith.truncf %79 : vector<4x8x8xf32> to vector<4x8x8xbf16>
    %cst_32 = arith.constant dense<0.000000e+00> : vector<4x8x16xf32>
    %81 = tpu.matmul %80, %64, %cst_32 {dimension_numbers = #tpu.dot_dimension_numbers<[2], [1], [1], [2], [0, 0, 0, 1, 1, 2], [0], [0]>} : vector<4x8x8xbf16>, vector<4x8x16xbf16>, vector<4x8x16xf32> -> vector<4x8x16xf32>
    %82 = arith.truncf %81 : vector<4x8x16xf32> to vector<4x8x16xbf16>
    %c0_33 = arith.constant 0 : index
    %c0_34 = arith.constant 0 : index
    %c0_35 = arith.constant 0 : index
    %c0_36 = arith.constant 0 : index
    %83 = vector.load %arg12[%c0_33, %c0_34, %c0_35, %c0_36] : memref<1x4x16x64xbf16, #tpu.memory_space<vmem>>, vector<1x4x16x64xbf16>
    %84 = vector.shape_cast %83 : vector<1x4x16x64xbf16> to vector<4x16x64xbf16>
    %cst_37 = arith.constant dense<0.000000e+00> : vector<4x8x64xf32>
    %85 = tpu.matmul %82, %84, %cst_37 {dimension_numbers = #tpu.dot_dimension_numbers<[2], [1], [1], [2], [0, 0, 0, 1, 1, 2], [0], [0]>} : vector<4x8x16xbf16>, vector<4x16x64xbf16>, vector<4x8x64xf32> -> vector<4x8x64xf32>
    %cst_38 = arith.constant dense<0.000000e+00> : vector<8x64xf32>
    %86 = vector.multi_reduction <add>, %85, %cst_38 [0] : vector<4x8x64xf32> to vector<8x64xf32>
    %cst_39 = arith.constant 0.699999988 : f32
    %87 = vector.broadcast %cst_39 : f32 to vector<8x64xf32>
    %88 = arith.mulf %86, %87 : vector<8x64xf32>
    %89 = arith.addf %3, %88 : vector<8x64xf32>
    %c0_40 = arith.constant 0 : index
    %c0_41 = arith.constant 0 : index
    %c0_42 = arith.constant 0 : index
    %90 = vector.load %arg13[%c0_40, %c0_41, %c0_42] : memref<1x1x64xf32, #tpu.memory_space<vmem>>, vector<1x1x64xf32>
    %91 = vector.shape_cast %90 : vector<1x1x64xf32> to vector<1x64xf32>
    %92 = arith.mulf %89, %89 : vector<8x64xf32>
    %cst_43 = arith.constant dense<0.000000e+00> : vector<8xf32>
    %93 = vector.multi_reduction <add>, %92, %cst_43 [1] : vector<8x64xf32> to vector<8xf32>
    %94 = vector.shape_cast %93 : vector<8xf32> to vector<8x1xf32>
    %cst_44 = arith.constant 6.400000e+01 : f32
    %95 = vector.broadcast %cst_44 : f32 to vector<8x1xf32>
    %96 = arith.divf %94, %95 : vector<8x1xf32>
    %cst_45 = arith.constant 9.99999997E-7 : f32
    %97 = vector.broadcast %cst_45 : f32 to vector<8x1xf32>
    %98 = arith.addf %96, %97 : vector<8x1xf32>
    %99 = math.rsqrt %98 : vector<8x1xf32>
    %100 = vector.broadcast %99 : vector<8x1xf32> to vector<8x64xf32>
    %101 = arith.mulf %89, %100 : vector<8x64xf32>
    %102 = vector.broadcast %91 : vector<1x64xf32> to vector<8x64xf32>
    %103 = arith.mulf %101, %102 : vector<8x64xf32>
    %104 = arith.truncf %103 : vector<8x64xf32> to vector<8x64xbf16>
    %c0_46 = arith.constant 0 : index
    %c0_47 = arith.constant 0 : index
    %c0_48 = arith.constant 0 : index
    %105 = vector.load %arg14[%c0_46, %c0_47, %c0_48] : memref<1x64x128xbf16, #tpu.memory_space<vmem>>, vector<1x64x128xbf16>
    %106 = vector.shape_cast %105 : vector<1x64x128xbf16> to vector<64x128xbf16>
    %cst_49 = arith.constant dense<0.000000e+00> : vector<8x128xf32>
    %107 = tpu.matmul %104, %106, %cst_49 {dimension_numbers = #tpu.dot_dimension_numbers<[1], [0], [0], [1], [0, 0, 1, 1], [], []>} : vector<8x64xbf16>, vector<64x128xbf16>, vector<8x128xf32> -> vector<8x128xf32>
    %c0_50 = arith.constant 0 : index
    %c0_51 = arith.constant 0 : index
    %c0_52 = arith.constant 0 : index
    %108 = vector.load %arg15[%c0_50, %c0_51, %c0_52] : memref<1x64x128xbf16, #tpu.memory_space<vmem>>, vector<1x64x128xbf16>
    %109 = vector.shape_cast %108 : vector<1x64x128xbf16> to vector<64x128xbf16>
    %cst_53 = arith.constant dense<0.000000e+00> : vector<8x128xf32>
    %110 = tpu.matmul %104, %109, %cst_53 {dimension_numbers = #tpu.dot_dimension_numbers<[1], [0], [0], [1], [0, 0, 1, 1], [], []>} : vector<8x64xbf16>, vector<64x128xbf16>, vector<8x128xf32> -> vector<8x128xf32>
    %111 = arith.negf %107 : vector<8x128xf32>
    %112 = math.exp %111 : vector<8x128xf32>
    %cst_54 = arith.constant 1.000000e+00 : f32
    %113 = vector.broadcast %cst_54 : f32 to vector<8x128xf32>
    %114 = arith.addf %113, %112 : vector<8x128xf32>
    %115 = arith.divf %113, %114 : vector<8x128xf32>
    %116 = arith.mulf %107, %115 : vector<8x128xf32>
    %117 = arith.mulf %116, %110 : vector<8x128xf32>
    %118 = arith.truncf %117 : vector<8x128xf32> to vector<8x128xbf16>
    %c0_55 = arith.constant 0 : index
    %c0_56 = arith.constant 0 : index
    %c0_57 = arith.constant 0 : index
    %119 = vector.load %arg16[%c0_55, %c0_56, %c0_57] : memref<1x128x64xbf16, #tpu.memory_space<vmem>>, vector<1x128x64xbf16>
    %120 = vector.shape_cast %119 : vector<1x128x64xbf16> to vector<128x64xbf16>
    %cst_58 = arith.constant dense<0.000000e+00> : vector<8x64xf32>
    %121 = tpu.matmul %118, %120, %cst_58 {dimension_numbers = #tpu.dot_dimension_numbers<[1], [0], [0], [1], [0, 0, 1, 1], [], []>} : vector<8x128xbf16>, vector<128x64xbf16>, vector<8x64xf32> -> vector<8x64xf32>
    %cst_59 = arith.constant 0.699999988 : f32
    %122 = vector.broadcast %cst_59 : f32 to vector<8x64xf32>
    %123 = arith.mulf %121, %122 : vector<8x64xf32>
    %124 = arith.addf %89, %123 : vector<8x64xf32>
    %c0_60 = arith.constant 0 : index
    %c0_61 = arith.constant 0 : index
    %125 = vector.load %arg18[%c0_60, %c0_61] : memref<8x64xf32, #tpu.memory_space<vmem>>, vector<8x64xf32>
    tpu.vector_store %arg18[%c0_60, %c0_61], %124 {strides = array<i32>} : memref<8x64xf32, #tpu.memory_space<vmem>>, vector<8x64xf32>,
    %c1_i32 = arith.constant 1 : i32
    %126 = arith.cmpi eq, %arg0, %c1_i32 : i32
    %127 = arith.extui %126 : i1 to i32
    %c0_i32_62 = arith.constant 0 : i32
    %128 = arith.cmpi ne, %127, %c0_i32_62 : i32
    scf.if %128 {
      %cst_63 = arith.constant 5.000000e-01 : f32
      %129 = vector.broadcast %cst_63 : f32 to vector<8x64xf32>
      %130 = arith.mulf %124, %129 : vector<8x64xf32>
      %c0_64 = arith.constant 0 : index
      %c0_65 = arith.constant 0 : index
      %131 = vector.load %arg17[%c0_64, %c0_65] : memref<8x64xf32, #tpu.memory_space<vmem>>, vector<8x64xf32>
      tpu.vector_store %arg17[%c0_64, %c0_65], %130 {strides = array<i32>} : memref<8x64xf32, #tpu.memory_space<vmem>>, vector<8x64xf32>,
    } else {
    }
    return
  }
  func.func @transform_0(%arg0: i32) -> (i32, i32) {
    %c0_i32 = arith.constant 0 : i32
    %c0_i32_0 = arith.constant 0 : i32
    %c0_i32_1 = arith.constant 0 : i32
    return %c0_i32, %c0_i32_0 : i32, i32
  }
  func.func @transform_1(%arg0: i32) -> (i32, i32) {
    %c0_i32 = arith.constant 0 : i32
    %c0_i32_0 = arith.constant 0 : i32
    %c0_i32_1 = arith.constant 0 : i32
    return %c0_i32, %c0_i32_0 : i32, i32
  }
  func.func @transform_2(%arg0: i32) -> (i32, i32) {
    %c0_i32 = arith.constant 0 : i32
    %c0_i32_0 = arith.constant 0 : i32
    %c0_i32_1 = arith.constant 0 : i32
    return %c0_i32, %c0_i32_0 : i32, i32
  }
  func.func @transform_3(%arg0: i32) -> (i32, i32) {
    %c0_i32 = arith.constant 0 : i32
    %c0_i32_0 = arith.constant 0 : i32
    %c0_i32_1 = arith.constant 0 : i32
    return %c0_i32, %c0_i32_0 : i32, i32
  }
  func.func @transform_4(%arg0: i32) -> (i32, i32) {
    %c0_i32 = arith.constant 0 : i32
    %c0_i32_0 = arith.constant 0 : i32
    %c0_i32_1 = arith.constant 0 : i32
    return %c0_i32, %c0_i32_0 : i32, i32
  }
  func.func @transform_5(%arg0: i32) -> (i32, i32) {
    %c0_i32 = arith.constant 0 : i32
    %c0_i32_0 = arith.constant 0 : i32
    %c0_i32_1 = arith.constant 0 : i32
    return %c0_i32, %c0_i32_0 : i32, i32
  }
  func.func @transform_6(%arg0: i32) -> (i32, i32) {
    %c0_i32 = arith.constant 0 : i32
    %c0_i32_0 = arith.constant 0 : i32
    %c0_i32_1 = arith.constant 0 : i32
    return %c0_i32, %c0_i32_0 : i32, i32
  }
  func.func @transform_7(%arg0: i32) -> (i32, i32, i32) {
    %c0_i32 = arith.constant 0 : i32
    %c0_i32_0 = arith.constant 0 : i32
    %c0_i32_1 = arith.constant 0 : i32
    return %arg0, %c0_i32, %c0_i32_0 : i32, i32, i32
  }
  func.func @transform_8(%arg0: i32) -> (i32, i32, i32, i32) {
    %c0_i32 = arith.constant 0 : i32
    %c0_i32_0 = arith.constant 0 : i32
    %c0_i32_1 = arith.constant 0 : i32
    %c0_i32_2 = arith.constant 0 : i32
    return %arg0, %c0_i32, %c0_i32_0, %c0_i32_1 : i32, i32, i32, i32
  }
  func.func @transform_9(%arg0: i32) -> (i32, i32, i32, i32) {
    %c0_i32 = arith.constant 0 : i32
    %c0_i32_0 = arith.constant 0 : i32
    %c0_i32_1 = arith.constant 0 : i32
    %c0_i32_2 = arith.constant 0 : i32
    return %arg0, %c0_i32, %c0_i32_0, %c0_i32_1 : i32, i32, i32, i32
  }
  func.func @transform_10(%arg0: i32) -> (i32, i32, i32, i32) {
    %c0_i32 = arith.constant 0 : i32
    %c0_i32_0 = arith.constant 0 : i32
    %c0_i32_1 = arith.constant 0 : i32
    %c0_i32_2 = arith.constant 0 : i32
    return %arg0, %c0_i32, %c0_i32_0, %c0_i32_1 : i32, i32, i32, i32
  }
  func.func @transform_11(%arg0: i32) -> (i32, i32, i32, i32) {
    %c0_i32 = arith.constant 0 : i32
    %c0_i32_0 = arith.constant 0 : i32
    %c0_i32_1 = arith.constant 0 : i32
    %c0_i32_2 = arith.constant 0 : i32
    return %arg0, %c0_i32, %c0_i32_0, %c0_i32_1 : i32, i32, i32, i32
  }
  func.func @transform_12(%arg0: i32) -> (i32, i32, i32) {
    %c0_i32 = arith.constant 0 : i32
    %c0_i32_0 = arith.constant 0 : i32
    %c0_i32_1 = arith.constant 0 : i32
    return %arg0, %c0_i32, %c0_i32_0 : i32, i32, i32
  }
  func.func @transform_13(%arg0: i32) -> (i32, i32, i32) {
    %c0_i32 = arith.constant 0 : i32
    %c0_i32_0 = arith.constant 0 : i32
    %c0_i32_1 = arith.constant 0 : i32
    return %arg0, %c0_i32, %c0_i32_0 : i32, i32, i32
  }
  func.func @transform_14(%arg0: i32) -> (i32, i32, i32) {
    %c0_i32 = arith.constant 0 : i32
    %c0_i32_0 = arith.constant 0 : i32
    %c0_i32_1 = arith.constant 0 : i32
    return %arg0, %c0_i32, %c0_i32_0 : i32, i32, i32
  }
  func.func @transform_15(%arg0: i32) -> (i32, i32, i32) {
    %c0_i32 = arith.constant 0 : i32
    %c0_i32_0 = arith.constant 0 : i32
    %c0_i32_1 = arith.constant 0 : i32
    return %arg0, %c0_i32, %c0_i32_0 : i32, i32, i32
  }
  func.func @transform_16(%arg0: i32) -> (i32, i32) {
    %c0_i32 = arith.constant 0 : i32
    %c0_i32_0 = arith.constant 0 : i32
    %c0_i32_1 = arith.constant 0 : i32
    return %c0_i32, %c0_i32_0 : i32, i32
  }
}

</mosaic_0001>

<bundles_post_ra>
// kernel: eagle_minicpm_forward.1
= control target key start
LH: loop header
LB: loop body
LE: loop exit
PB: predicated region body
PF: predicated region fallthrough
CT: control target
= control target key end

     0   :  { %s3187_s21 = smov 0   ;;  %s3599_s0 = inlined_call_operand.vmem [shape: f32[8,64], index: 0, kind: input, shape index: {}]   ;;  %s3600_s1 = inlined_call_operand.vmem [shape: f32[8,64], index: 1, kind: input, shape index: {}]   ;;  %s3601_s2 = inlined_call_operand.vmem [shape: f32[1,64], index: 2, kind: input, shape index: {}]   ;;  %s3602_s3 = inlined_call_operand.vmem [shape: f32[1,64], index: 3, kind: input, shape index: {}]   ;;  %s3603_s4 = inlined_call_operand.vmem [shape: bf16[128,64], index: 4, kind: input, shape index: {}]   ;;  %s3604_s5 = inlined_call_operand.vmem [shape: f32[8,16], index: 5, kind: input, shape index: {}]   ;;  %s3605_s6 = inlined_call_operand.vmem [shape: f32[8,16], index: 6, kind: input, shape index: {}]   ;;  %s3606_s7 = inlined_call_operand.vmem [shape: f32[2,1,64], index: 7, kind: input, shape index: {}]   ;;  %s3607_s8 = inlined_call_operand.vmem [shape: bf16[2,4,64,16], index: 8, kind: input, shape index: {}]   ;;  %s3608_s9 = inlined_call_operand.vmem [shape: bf16[2,2,64,16], index: 9, kind: input, shape index: {}]   ;;  %s3609_s10 = inlined_call_operand.vmem [shape: bf16[2,2,64,16], index: 10, kind: input, shape index: {}]   ;;  %s3610_s11 = inlined_call_operand.vmem [shape: bf16[2,4,16,64], index: 11, kind: input, shape index: {}]   ;;  %s3611_s12 = inlined_call_operand.vmem [shape: f32[2,1,64], index: 12, kind: input, shape index: {}]   ;;  %s3612_s13 = inlined_call_operand.vmem [shape: bf16[2,64,128], index: 13, kind: input, shape index: {}]   ;;  %s3613_s14 = inlined_call_operand.vmem [shape: bf16[2,64,128], index: 14, kind: input, shape index: {}]   ;;  %s3614_s15 = inlined_call_operand.vmem [shape: bf16[2,128,64], index: 15, kind: input, shape index: {}]   ;;  %s3615_s16 = inlined_call_operand.vmem [shape: f32[8,64], index: 16, kind: output, shape index: {}]  }
   0x1   :  { %3617 = sst [smem:[#allocation4_spill]] %s3599_s0 }
   0x2   :  { %3618 = sst [smem:[#allocation5_spill]] %s3604_s5 }
   0x3   :  { %3619 = sst [smem:[#allocation6_spill]] %s3605_s6 }
   0x4   :  { %3620 = sst [smem:[#allocation7_spill]] %s3607_s8 }
   0x5   :  { %3621 = sst [smem:[#allocation8_spill]] %s3608_s9 }
   0x6   :  { %3622 = sst [smem:[#allocation9_spill]] %s3609_s10 }
   0x7   :  { %3623 = sst [smem:[#allocation10_spill]] %s3615_s16 }
   0x8 LB: > { %3624 = sst [smem:[#allocation3_spill]] %s3092_s21  ;;  %s3193_s22 = sadd.s32 4294967295, %s3092_s21   ;;  %s3092_s21 = sphi %s3187_s21, %s26_s21  }
   0x9   : > { %p2544_p0 = scmp.ge.s32.totalorder %s3092_s21, 1  ;;  %p533_p1 = scmp.lt.s32.totalorder %s3092_s21, 3 }
   0xb   : > { %p534_p2 = pnand %p2544_p0, %p533_p1 }
   0xc   : > { %p614_p3 = scmp.lt.s32.totalorder (!%p534_p2), %s3193_s22, 1  ;;  %s3625_s8 = sld [smem:[#allocation7_spill]] (!%p534_p2) }
   0xd   : > { %537 = sbr.rel (%p534_p2) target bundleno = 2904 (0xb58), region = 84  ;;  %s3626_s9 = sld [smem:[#allocation8_spill]] (!%p534_p2) }
   0xe   : > { %s3627_s10 = sld [smem:[#allocation9_spill]] (!%p534_p2)  ;;  %p2559_p4 = scmp.ne.s32.totalorder (!%p534_p2), %s3193_s22, 0 }
  0x14   : > { %s3199_s23 = scalar_select %p614_p3, %s3193_s22, 1 }
  0x15   : > { %659 = sbr.rel (%p2559_p4) target bundleno = 519 (0x207), region = 88  ;;  %v662_v0 = vld [vmem:[%s3600_s1] sm:$0xff] (!%p2559_p4)  ;;  %vm665_vm0 = vcmask (!%p2559_p4), 523264   ;;  %s3628_s29 = sld [smem:[#allocation4_spill]] (!%p2559_p4)  ;;  %v3094_v8 = vmov (!%p2559_p4), 0.0   ;;  %v2998_v9 = vld [vmem:[%s3603_s4 + $0x8] sm:$0xff] (!%p2559_p4)  }
  0x16   : > { %s2650_s27 = sshll.u32 %s3199_s23, 7  ;;  %s2651_s0 = sshll.u32 %s3199_s23, 6  ;;  %v682_v2 = vmul.f32 (!%p2559_p4), %v662_v0, %v662_v0  ;;  %v2997_v7 = vld [vmem:[%s3603_s4] sm:$0xff] (!%p2559_p4)   ;;  %2749 = vmatprep.subr.bf16.mxu0 (!%p2559_p4), %v3094_v8  ;;  %v2999_v10 = vld [vmem:[%s3603_s4 + $0x10] sm:$0xff] (!%p2559_p4)   ;;  %v3000_v11 = vld [vmem:[%s3603_s4 + $0x18] sm:$0xff] (!%p2559_p4)   ;;  %vm3095_vm1 = vmmov (!%p2559_p4), 0  }
  0x17   : > { %s3209_s30 = scalar_lea.vmem %s3625_s8, %s2650_s27  ;;  %s3215_s19 = scalar_lea.vmem %s3626_s9, %s2651_s0  ;;  %2750 = vmatpush3.bf16.msra.mxu0 (!%p2559_p4), %v2997_v7  ;;  %v3001_v12 = vld [vmem:[%s3603_s4 + $0x20] sm:$0xff] (!%p2559_p4)   ;;  %v3002_v13 = vld [vmem:[%s3603_s4 + $0x28] sm:$0xff] (!%p2559_p4)   ;;  %v3003_v14 = vld [vmem:[%s3603_s4 + $0x30] sm:$0xff] (!%p2559_p4)   ;;  %2765 = vmatprep.mubr.msk.bf16.mxu0 (!%p2559_p4), %vm3095_vm1, %v3094_v8 }
  0x18   : > { %s3220_s24 = scalar_lea.vmem %s3627_s10, %s2651_s0  ;;  %s2653_s25 = sshll.u32 %s3199_s23, 5  ;;  %v683_v4 = vsel (!%p2559_p4), %vm665_vm0, %v682_v2, 0.0  ;;  %2751 = vmatprep.subr.bf16.mxu0 (!%p2559_p4), %v3094_v8  ;;  %v3004_v18 = vld [vmem:[%s3603_s4 + $0x38] sm:$0xff] (!%p2559_p4)   ;;  %v2561_v20 = vld [vmem:[%s3602_s3] ss:$0 sm:$0xff] (!%p2559_p4) }
  0x19   : > { %s639_s5 = scalar_lea.vmem %s3611_s12, %s3199_s23  ;;  %s3230_s27 = scalar_lea.vmem %s3610_s11, %s2653_s25  ;;  %684 = vadd.xlane.f32.xlu0 (!%p2559_p4), %v683_v4  ;;  %v2560_v28 = vld [vmem:[%s3601_s2] ss:$0 sm:$0xff] (!%p2559_p4) }
  0x1a   : > { %s3235_s17 = scalar_lea.vmem %s3612_s13, %s2653_s25  ;;  %s3240_s21 = scalar_lea.vmem %s3613_s14, %s2653_s25 }
  0x1b   : > { %s3245_s16 = scalar_lea.vmem %s3614_s15, %s2651_s0  ;;  %v660_v1 = vld [vmem:[%s3628_s29] sm:$0xff] (!%p2559_p4)  ;;  %2752 = vmatpush3.bf16.msra.mxu0 (!%p2559_p4), %v2998_v9  ;;  %s3096_s26 = smov (!%p2559_p4), 64  }
  0x1c   : > { %v661_v3 = vmul.f32 12.0, %v660_v1  ;;  %2753 = vmatprep.subr.bf16.mxu0 %v3094_v8 }
  0x1e   : > { %v664_v5 = vmul.f32 %v661_v3, %v661_v3 }
  0x1f   : > { %2754 = vmatpush3.bf16.msra.mxu0 %v2999_v10 }
  0x20   : > { %v666_v6 = vsel %vm665_vm0, %v664_v5, 0.0  ;;  %2755 = vmatprep.subr.bf16.mxu0 %v3094_v8 }
  0x21   : > { %667 = vadd.xlane.f32.xlu0 %v666_v6 }
  0x23   : > { %2756 = vmatpush3.bf16.msra.mxu0 %v3000_v11 }
  0x24   : > { %2757 = vmatprep.subr.bf16.mxu0 %v3094_v8 }
  0x27   : > { %2758 = vmatpush3.bf16.msra.mxu0 %v3001_v12 }
  0x28   : > { %2759 = vmatprep.subr.bf16.mxu0 %v3094_v8 }
  0x2b   : > { %2760 = vmatpush3.bf16.msra.mxu0 %v3002_v13 }
  0x2c   : > { %2761 = vmatprep.subr.bf16.mxu0 %v3094_v8 }
  0x2f   : > { %2762 = vmatpush3.bf16.msra.mxu0 %v3003_v14 }
  0x30   : > { %2763 = vmatprep.subr.bf16.mxu0 %v3094_v8 }
  0x33   : > { %2764 = vmatpush3.bf16.msra.mxu0 %v3004_v18 }
  0xa6   : > { %v685_v15 = vpop.xlane.xlu0 %684 }
  0xa7   : > { %v686_v16 = vmul.f32 0.015625, %v685_v15 }
  0xa9   : > { %v687_v17 = vadd.f32 1e-06, %v686_v16 }
  0xab   : > { %3005 = vrsqrt.f32 %v687_v17 }
  0xae   : > { %v668_v23 = vpop.xlane.xlu0 %667 }
  0xaf   : > { %v670_v24 = vmul.f32 0.015625, %v668_v23 }
  0xb1   : > { %v671_v25 = vadd.f32 1e-06, %v670_v24 }
  0xb3   : > { %3007 = vrsqrt.f32 %v671_v25 }
  0xb5   : > { %v3006_v19 = vpop.eup %3005 }
  0xb6   : > { %v689_v21 = vmul.f32 %v3006_v19, %v662_v0 }
  0xb8   : > { %v696_v22 = vmul.f32 %v2561_v20, %v689_v21 }
  0xba   : > { %698 = vrot.lane.b32.xlu1 %v696_v22, %s3096_s26 }
  0xbd   : > { %v3008_v26 = vpop.eup %3007 }
  0xbe   : > { %v673_v27 = vmul.f32 %v3008_v26, %v661_v3 }
  0xc0   : > { %v680_v29 = vmul.f32 %v2560_v28, %v673_v27 }
 0x12c   : > { %v699_v30 = vpop.permute.xlu1 %698 }
 0x12d   : > { %v701_v31 = vsel %vm665_vm0, %v680_v29, %v699_v30 }
 0x12e   : > { %v702_v32 = vpack.c.bf16 %v701_v31, %v701_v31 }
 0x130   : > { %2766 = vmatmul.mubr.bf16.vlgmr.msra.gmra.mrb[0].mxu0 %v702_v32 }
 0x203   : > { %v801_v33 = vpop.f32.mrb[0].mxu0 }
 0x204   : > { %807 = vst.msk [vmem:[#allocation2] sm:$0xff] %vm665_vm0, %v801_v33  ;;  %v2767_v34 = vpop.f32.mrb[1].mxu0 }
 0x205   : > { %v804_v35 = vpop.f32.mrb[2].mxu0 }
 0x206   : > { %v2768_v36 = vpop.f32.mrb[3].mxu0 }
 0x207 PF: > { %vm813_vm2 = vcmask 523264   ;;  %v3009_v40 = vld [vmem:[%s3209_s30] sm:$0xff]   ;;  %v3097_v42 = vmov 0.0   ;;  %v3011_v43 = vld [vmem:[%s3209_s30 + $0x8] sm:$0xff]   ;;  %v3013_v45 = vld [vmem:[%s3209_s30 + $0x10] sm:$0xff]   ;;  %vm3098_vm3 = vmmov 0   ;;  %s3629_s10 = scalar_lea.vmem %s3606_s7, %s3199_s23 }
 0x208   : > { %v3010_v41 = vld [vmem:[%s3209_s30 + $0x40] sm:$0xff]   ;;  %2769 = vmatprep.subr.bf16.mxu1 %v3097_v42  ;;  %2793 = vmatprep.subr.bf16.mxu0 %v3097_v42  ;;  %v3012_v44 = vld [vmem:[%s3209_s30 + $0x48] sm:$0xff]   ;;  %v3014_v46 = vld [vmem:[%s3209_s30 + $0x50] sm:$0xff]   ;;  %vm1744_vm4 = vcmask 1043456   ;;  %vm1413_vm5 = vcmask 1047680   ;;  %s3630_s0 = sld [smem:[#allocation6_spill]] }
 0x209   : > { %2770 = vmatpush3.bf16.msra.mxu1 %v3009_v40  ;;  %2794 = vmatpush3.bf16.msra.mxu0 %v3010_v41  ;;  %v3015_v47 = vld [vmem:[%s3209_s30 + $0x18] sm:$0xff]   ;;  %v2570_v53 = vld [vmem:[%s3629_s10] ss:$0 sm:$0xff]  ;;  %v3019_v59 = vld [vmem:[%s3209_s30 + $0x28] sm:$0xff]   ;;  %s3100_s25 = smov 8   ;;  %s3101_s18 = smov 120  }
 0x20a   : > { %2771 = vmatprep.subr.bf16.mxu1 %v3097_v42  ;;  %2795 = vmatprep.subr.bf16.mxu0 %v3097_v42  ;;  %v3016_v48 = vld [vmem:[%s3209_s30 + $0x58] sm:$0xff]   ;;  %v3017_v56 = vld [vmem:[%s3209_s30 + $0x20] sm:$0xff]   ;;  %v3020_v60 = vld [vmem:[%s3215_s19 + $0x8] sm:$0xff]   ;;  %s3631_s26 = sld [smem:[#allocation5_spill]]  ;;  %vm1504_vm6 = vcmask 130048   ;;  %vm1692_vm8 = vcmask 64512  }
 0x20b   : > { %v808_v37 = vld [vmem:[#allocation2] sm:$0xff]  ;;  %2777 = vmatprep.mubr.msk.bf16.mxu1 %vm3098_vm3, %v3097_v42  ;;  %2801 = vmatprep.mubr.msk.bf16.mxu0 %vm3098_vm3, %v3097_v42  ;;  %v3021_v61 = vld [vmem:[%s3209_s30 + $0x30] sm:$0xff]   ;;  %v3023_v63 = vld [vmem:[%s3209_s30 + $0x38] sm:$0xff]   ;;  %p2647_p5 = scmp.ne.s32.totalorder %s3193_s22, 1 }
 0x20c   : > { %v812_v38 = vmul.f32 %v808_v37, %v808_v37  ;;  %v3018_v57 = vld [vmem:[%s3215_s19] sm:$0xff]   ;;  %v3022_v62 = vld [vmem:[%s3215_s19 + $0x10] sm:$0xff]   ;;  %v3024_v0 = vld [vmem:[%s3215_s19 + $0x18] sm:$0xff]  }
 0x20d   : > { %2772 = vmatpush3.bf16.msra.mxu1 %v3011_v43  ;;  %2796 = vmatpush3.bf16.msra.mxu0 %v3012_v44  ;;  %v3025_v1 = vld [vmem:[%s3209_s30 + $0x60] sm:$0xff]   ;;  %v3027_v3 = vld [vmem:[%s3209_s30 + $0x68] sm:$0xff]   ;;  %v3029_v5 = vld [vmem:[%s3209_s30 + $0x70] sm:$0xff]  }
 0x20e   : > { %v814_v39 = vsel %vm813_vm2, %v812_v38, 0.0  ;;  %2773 = vmatprep.subr.bf16.mxu1 %v3097_v42  ;;  %2797 = vmatprep.subr.bf16.mxu0 %v3097_v42  ;;  %v3026_v2 = vld [vmem:[%s3220_s24] sm:$0xff]   ;;  %v3028_v4 = vld [vmem:[%s3220_s24 + $0x8] sm:$0xff]   ;;  %v3030_v6 = vld [vmem:[%s3220_s24 + $0x10] sm:$0xff]  }
 0x20f   : > { %815 = vadd.xlane.f32.xlu0 %v814_v39  ;;  %v3031_v7 = vld [vmem:[%s3209_s30 + $0x78] sm:$0xff]   ;;  %v3033_v9 = vld [vmem:[%s3215_s19 + $0x20] sm:$0xff]   ;;  %v3034_v10 = vld [vmem:[%s3215_s19 + $0x28] sm:$0xff]   ;;  %s3099_s30 = smov 16  }
 0x210   : > { %v3032_v8 = vld [vmem:[%s3220_s24 + $0x18] sm:$0xff]   ;;  %v3035_v11 = vld [vmem:[%s3215_s19 + $0x30] sm:$0xff]   ;;  %v3037_v13 = vld [vmem:[%s3220_s24 + $0x20] sm:$0xff]  }
 0x211   : > { %2774 = vmatpush3.bf16.msra.mxu1 %v3013_v45  ;;  %2798 = vmatpush3.bf16.msra.mxu0 %v3014_v46  ;;  %v3036_v12 = vld [vmem:[%s3215_s19 + $0x38] sm:$0xff]   ;;  %v3038_v14 = vld [vmem:[%s3220_s24 + $0x28] sm:$0xff]   ;;  %v3039_v15 = vld [vmem:[%s3220_s24 + $0x30] sm:$0xff]  }
 0x212   : > { %2775 = vmatprep.subr.bf16.mxu1 %v3097_v42  ;;  %2799 = vmatprep.subr.bf16.mxu0 %v3097_v42  ;;  %v3040_v16 = vld [vmem:[%s3220_s24 + $0x38] sm:$0xff]  }
 0x215   : > { %2776 = vmatpush3.bf16.msra.mxu1 %v3015_v47  ;;  %2800 = vmatpush3.bf16.msra.mxu0 %v3016_v48 }
 0x216   : > { %2781 = vmatprep.subr.bf16.mxu1 %v3097_v42  ;;  %2817 = vmatprep.subr.bf16.mxu0 %v3097_v42 }
 0x29c   : > { %v816_v49 = vpop.xlane.xlu0 %815 }
 0x29d   : > { %v818_v50 = vmul.f32 0.015625, %v816_v49 }
 0x29f   : > { %v819_v51 = vadd.f32 1e-06, %v818_v50 }
 0x2a1   : > { %3061 = vrsqrt.f32 %v819_v51 }
 0x2ab   : > { %v3062_v52 = vpop.eup %3061 }
 0x2ac   : > { %v821_v54 = vmul.f32 %v3062_v52, %v808_v37 }
 0x2ae   : > { %v828_v55 = vmul.f32 %v2570_v53, %v821_v54 }
 0x2b0   : > { %v3318_v58 = vpack.c.bf16 %v828_v55, %v828_v55 }
 0x2b2   : > { %2778 = vmatmul.mubr.msk.bf16.vlgmr.msra.gmra.mrb[0].mxu1 %vm813_vm2, %v3318_v58  ;;  %2802 = vmatmul.mubr.msk.bf16.vlgmr.msra.gmra.mrb[0].mxu0 %vm813_vm2, %v3318_v58 }
 0x2b3   : > { %2782 = vmatpush3.bf16.msra.mxu1 %v3017_v56  ;;  %2818 = vmatpush3.bf16.msra.mxu0 %v3018_v57  ;;  %v810_v56 = vld [vmem:[%s3630_s0] sm:$0xff] }
 0x2b4   : > { %2783 = vmatprep.subr.bf16.mxu1 %v3097_v42  ;;  %2819 = vmatprep.subr.bf16.mxu0 %v3097_v42 }
 0x2b5   : > { %2789 = vmatprep.mubr.msk.bf16.mxu1 %vm3098_vm3, %v3097_v42  ;;  %2825 = vmatprep.mubr.msk.bf16.mxu0 %vm3098_vm3, %v3097_v42 }
 0x2b7   : > { %2784 = vmatpush3.bf16.msra.mxu1 %v3019_v59  ;;  %2820 = vmatpush3.bf16.msra.mxu0 %v3020_v60 }
 0x2b8   : > { %2785 = vmatprep.subr.bf16.mxu1 %v3097_v42  ;;  %2821 = vmatprep.subr.bf16.mxu0 %v3097_v42 }
 0x2bb   : > { %2786 = vmatpush3.bf16.msra.mxu1 %v3021_v61  ;;  %2822 = vmatpush3.bf16.msra.mxu0 %v3022_v62 }
 0x2bc   : > { %2787 = vmatprep.subr.bf16.mxu1 %v3097_v42  ;;  %2823 = vmatprep.subr.bf16.mxu0 %v3097_v42 }
 0x2bf   : > { %2788 = vmatpush3.bf16.msra.mxu1 %v3023_v63  ;;  %2824 = vmatpush3.bf16.msra.mxu0 %v3024_v0 }
 0x2c0   : > { %2805 = vmatprep.subr.bf16.mxu1 %v3097_v42  ;;  %2841 = vmatprep.subr.bf16.mxu0 %v3097_v42 }
 0x2c2   : > { %2790 = vmatmul.mubr.msk.bf16.vlgmr.msra.gmra.mrb[4].mxu1 %vm813_vm2, %v3318_v58  ;;  %2826 = vmatmul.mubr.msk.bf16.vlgmr.msra.gmra.mrb[4].mxu0 %vm813_vm2, %v3318_v58 }
 0x2c3   : > { %2806 = vmatpush3.bf16.msra.mxu1 %v3025_v1  ;;  %2842 = vmatpush3.bf16.msra.mxu0 %v3026_v2 }
 0x2c4   : > { %2807 = vmatprep.subr.bf16.mxu1 %v3097_v42  ;;  %2843 = vmatprep.subr.bf16.mxu0 %v3097_v42 }
 0x2c5   : > { %2813 = vmatprep.mubr.msk.bf16.mxu1 %vm3098_vm3, %v3097_v42  ;;  %2849 = vmatprep.mubr.msk.bf16.mxu0 %vm3098_vm3, %v3097_v42 }
 0x2c7   : > { %2808 = vmatpush3.bf16.msra.mxu1 %v3027_v3  ;;  %2844 = vmatpush3.bf16.msra.mxu0 %v3028_v4 }
 0x2c8   : > { %2809 = vmatprep.subr.bf16.mxu1 %v3097_v42  ;;  %2845 = vmatprep.subr.bf16.mxu0 %v3097_v42 }
 0x2cb   : > { %2810 = vmatpush3.bf16.msra.mxu1 %v3029_v5  ;;  %2846 = vmatpush3.bf16.msra.mxu0 %v3030_v6 }
 0x2cc   : > { %2811 = vmatprep.subr.bf16.mxu1 %v3097_v42  ;;  %2847 = vmatprep.subr.bf16.mxu0 %v3097_v42 }
 0x2cf   : > { %2812 = vmatpush3.bf16.msra.mxu1 %v3031_v7  ;;  %2848 = vmatpush3.bf16.msra.mxu0 %v3032_v8 }
 0x2d0   : > { %2829 = vmatprep.subr.bf16.mxu1 %v3097_v42  ;;  %2865 = vmatprep.subr.bf16.mxu0 %v3097_v42 }
 0x2d2   : > { %2814 = vmatmul.mubr.msk.bf16.vlgmr.msra.gmra.mrb[8].mxu1 %vm813_vm2, %v3318_v58  ;;  %2850 = vmatmul.mubr.msk.bf16.vlgmr.msra.gmra.mrb[8].mxu0 %vm813_vm2, %v3318_v58 }
 0x2d3   : > { %2830 = vmatpush3.bf16.msra.mxu1 %v3033_v9  ;;  %2837 = vmatprep.mubr.msk.bf16.mxu1 %vm3098_vm3, %v3097_v42 }
 0x2d4   : > { %2831 = vmatprep.subr.bf16.mxu1 %v3097_v42  ;;  %2867 = vmatprep.mubr.msk.bf16.mxu0 %vm3098_vm3, %v3097_v42 }
 0x2d7   : > { %2832 = vmatpush3.bf16.msra.mxu1 %v3034_v10 }
 0x2d8   : > { %2833 = vmatprep.subr.bf16.mxu1 %v3097_v42 }
 0x2db   : > { %2834 = vmatpush3.bf16.msra.mxu1 %v3035_v11 }
 0x2dc   : > { %2835 = vmatprep.subr.bf16.mxu1 %v3097_v42 }
 0x2df   : > { %2836 = vmatpush3.bf16.msra.mxu1 %v3036_v12 }
 0x2e0   : > { %2853 = vmatprep.subr.bf16.mxu1 %v3097_v42 }
 0x2e2   : > { %2838 = vmatmul.mubr.msk.bf16.vlgmr.msra.gmra.mrb[12].mxu1 %vm813_vm2, %v3318_v58 }
 0x2e3   : > { %2854 = vmatpush3.bf16.msra.mxu1 %v3037_v13  ;;  %2861 = vmatprep.mubr.msk.bf16.mxu1 %vm3098_vm3, %v3097_v42 }
 0x2e4   : > { %2855 = vmatprep.subr.bf16.mxu1 %v3097_v42 }
 0x2e7   : > { %2856 = vmatpush3.bf16.msra.mxu1 %v3038_v14 }
 0x2e8   : > { %2857 = vmatprep.subr.bf16.mxu1 %v3097_v42 }
 0x2eb   : > { %2858 = vmatpush3.bf16.msra.mxu1 %v3039_v15 }
 0x2ec   : > { %2859 = vmatprep.subr.bf16.mxu1 %v3097_v42 }
 0x2ef   : > { %2860 = vmatpush3.bf16.msra.mxu1 %v3040_v16 }
 0x2f0   : > { %2871 = vmatprep.subr.bf16.mxu1 %v3097_v42 }
 0x2f2   : > { %2862 = vmatmul.mubr.msk.bf16.vlgmr.msra.gmra.mrb[16].mxu1 %vm813_vm2, %v3318_v58 }
 0x2f3   : > { %2873 = vmatprep.mubr.msk.bf16.mxu1 %vm3098_vm3, %v3097_v42 }
 0x385   : > { %v3398_v17 = vpop.f32.mrb[0].mxu1  ;;  %v3400_v18 = vpop.f32.mrb[0].mxu0 }
 0x386   : > { %v2803_v19 = vpop.f32.mrb[1].mxu0  ;;  %1414 = vrot.lane.b32.xlu1 %v3398_v17, %s3099_s30  ;;  %v2779_v20 = vpop.f32.mrb[1].mxu1 }
 0x387   : > { %v926_v21 = vpop.f32.mrb[2].mxu1  ;;  %v1054_v22 = vpop.f32.mrb[2].mxu0 }
 0x388   : > { %v2780_v23 = vpop.f32.mrb[3].mxu1  ;;  %v2804_v24 = vpop.f32.mrb[3].mxu0  ;;  %v809_v22 = vld [vmem:[%s3631_s26] sm:$0xff] }
 0x395   : > { %v3404_v25 = vpop.f32.mrb[4].mxu1  ;;  %v3406_v26 = vpop.f32.mrb[4].mxu0 }
 0x396   : > { %1472 = vrot.lane.b32.xlu0 %v3406_v26, %s3099_s30  ;;  %v2827_v27 = vpop.f32.mrb[5].mxu0  ;;  %1417 = vrot.lane.b32.xlu1 %v3404_v25, %s3099_s30  ;;  %v2791_v28 = vpop.f32.mrb[5].mxu1  ;;  %v1470_v23 = vmul.f32 %v3406_v26, %v809_v22 }
 0x397   : > { %v990_v29 = vpop.f32.mrb[6].mxu1  ;;  %v1198_v30 = vpop.f32.mrb[6].mxu0  ;;  %v1409_v28 = vmul.f32 %v3398_v17, %v809_v22 }
 0x398   : > { %v2792_v31 = vpop.f32.mrb[7].mxu1  ;;  %v2828_v32 = vpop.f32.mrb[7].mxu0 }
 0x399   : > { %v1410_v32 = vmul.f32 %v3404_v25, %v809_v22 }
 0x3a5   : > { %v3412_v33 = vpop.f32.mrb[8].mxu1  ;;  %v3414_v34 = vpop.f32.mrb[8].mxu0 }
 0x3a6   : > { %v2815_v35 = vpop.f32.mrb[9].mxu1  ;;  %v2851_v36 = vpop.f32.mrb[9].mxu0 }
 0x3a7   : > { %v1118_v37 = vpop.f32.mrb[10].mxu1  ;;  %v1342_v38 = vpop.f32.mrb[10].mxu0 }
 0x3a8   : > { %v2816_v39 = vpop.f32.mrb[11].mxu1  ;;  %v2852_v40 = vpop.f32.mrb[11].mxu0 }
 0x3b5   : > { %v3416_v41 = vpop.f32.mrb[12].mxu1 }
 0x3b6   : > { %1475 = vrot.lane.b32.xlu1 %v3416_v41, %s3099_s30  ;;  %v2839_v43 = vpop.f32.mrb[13].mxu1 }
 0x3b7   : > { %v1262_v44 = vpop.f32.mrb[14].mxu1 }
 0x3b8   : > { %v2840_v45 = vpop.f32.mrb[15].mxu1 }
 0x3b9   : > { %v1411_v45 = vmul.f32 %v3400_v18, %v809_v22 }
 0x3ba   : > { %1420 = vrot.lane.b32.xlu1 %v3400_v18, %s3099_s30 }
 0x3be   : > { %1423 = vrot.lane.b32.xlu1 %v3412_v33, %s3099_s30 }
 0x3c5   : > { %v1403_v46 = vpop.f32.mrb[16].mxu1 }
 0x3c6   : > { %v1503_v47 = vpack.c.bf16 %v1403_v46, %v1403_v46  ;;  %v2863_v48 = vpop.f32.mrb[17].mxu1 }
 0x3c7   : > { %v1406_v49 = vpop.f32.mrb[18].mxu1 }
 0x3c8   : > { %v3425_v50 = vsel %vm1744_vm4, %v1503_v47, 0  ;;  %v2864_v51 = vpop.f32.mrb[19].mxu1 }
 0x3c9   : > { %v1412_v51 = vmul.f32 %v3412_v33, %v809_v22 }
 0x3f8   : > { %v1415_v52 = vpop.permute.xlu1 %1414 }
 0x3f9   : > { %v1416_v53 = vsel %vm1413_vm5, %v1415_v52, %v3398_v17 }
 0x3fa   : > { %1426 = vrot.lane.b32.xlu0 %v1416_v53, %s3099_s30 }
 0x408   : > { %v1473_v54 = vpop.permute.xlu0 %1472  ;;  %v1418_v57 = vpop.permute.xlu1 %1417 }
 0x409   : > { %v1474_v55 = vsel %vm1413_vm5, %v1473_v54, %v3406_v26  ;;  %v1419_v58 = vsel %vm1413_vm5, %v1418_v57, %v3404_v25 }
 0x40a   : > { %1478 = vrot.lane.b32.xlu1 %v1474_v55, %s3099_s30 }
 0x40e   : > { %1439 = vrot.lane.b32.xlu1 %v810_v56, %s3100_s25 }
 0x412   : > { %1428 = vrot.lane.b32.xlu1 %v1419_v58, %s3099_s30 }
 0x428   : > { %v1476_v59 = vpop.permute.xlu1 %1475 }
 0x429   : > { %v1477_v60 = vsel %vm1413_vm5, %v1476_v59, %v3416_v41 }
 0x42a   : > { %1480 = vrot.lane.b32.xlu0 %v1477_v60, %s3099_s30 }
 0x42c   : > { %v1421_v61 = vpop.permute.xlu1 %1420 }
 0x42d   : > { %v1422_v62 = vsel %vm1413_vm5, %v1421_v61, %v3400_v18 }
 0x42e   : > { %1430 = vrot.lane.b32.xlu1 %v1422_v62, %s3099_s30 }
 0x430   : > { %v1424_v63 = vpop.permute.xlu1 %1423 }
 0x431   : > { %v1425_v0 = vsel %vm1413_vm5, %v1424_v63, %v3412_v33 }
 0x432   : > { %1432 = vrot.lane.b32.xlu0 %v1425_v0, %s3099_s30 }
 0x46c   : > { %v1427_v2 = vpop.permute.xlu0 %1426 }
 0x46d   : > { %v1434_v3 = vsel %vm1413_vm5, %v1427_v2, %v3398_v17 }
 0x47c   : > { %v1479_v1 = vpop.permute.xlu1 %1478 }
 0x47d   : > { %v1482_v4 = vsel %vm1413_vm5, %v1479_v1, %v3406_v26 }
 0x480   : > { %v1440_v5 = vpop.permute.xlu1 %1439 }
 0x481   : > { %v1442_v6 = vmul.f32 %v1440_v5, %v1434_v3  ;;  %v1484_v7 = vmul.f32 %v1482_v4, %v1440_v5 }
 0x483   : > { %1450 = vrot.lane.b32.xlu0 %v1442_v6, %s3101_s18  ;;  %1488 = vrot.lane.b32.xlu1 %v1484_v7, %s3101_s18 }
 0x484   : > { %v1429_v8 = vpop.permute.xlu1 %1428 }
 0x485   : > { %v1435_v9 = vsel %vm1413_vm5, %v1429_v8, %v3404_v25  ;;  %v1471_v25 = vmul.f32 %v3416_v41, %v809_v22 }
 0x486   : > { %v1443_v10 = vmul.f32 %v1440_v5, %v1435_v9 }
 0x488   : > { %1452 = vrot.lane.b32.xlu1 %v1443_v10, %s3101_s18 }
 0x49c   : > { %v1481_v11 = vpop.permute.xlu0 %1480 }
 0x49d   : > { %v1483_v12 = vsel %vm1413_vm5, %v1481_v11, %v3416_v41  ;;  %v1502_v41 = vpack.c.bf16 %v3414_v34, %v3414_v34 }
 0x49e   : > { %v1485_v13 = vmul.f32 %v1483_v12, %v1440_v5 }
 0x49f   : > { %v1746_v55 = vsel %vm1744_vm4, %v1502_v41, 0 }
 0x4a0   : > { %1490 = vrot.lane.b32.xlu0 %v1485_v13, %s3101_s18  ;;  %v1431_v14 = vpop.permute.xlu1 %1430 }
 0x4a1   : > { %v1436_v15 = vsel %vm1413_vm5, %v1431_v14, %v3400_v18 }
 0x4a2   : > { %v1444_v16 = vmul.f32 %v1440_v5, %v1436_v15 }
 0x4a4   : > { %v1433_v19 = vpop.permute.xlu0 %1432  ;;  %1454 = vrot.lane.b32.xlu1 %v1444_v16, %s3101_s18 }
 0x4a5   : > { %v1437_v20 = vsel %vm1413_vm5, %v1433_v19, %v3412_v33  ;;  %v1683_v33 = vlaneseq }
 0x4a6   : > { %v1445_v21 = vmul.f32 %v1440_v5, %v1437_v20 }
 0x4a7   : > { %v1684_v34 = vshrl.u32 %v1683_v33, 7  ;;  %v1686_v57 = vand.u32 127, %v1683_v33  ;;  %v3041_v33 = vld [vmem:[%s3230_s27] sm:$0xff]  }
 0x4a8   : > { %1456 = vrot.lane.b32.xlu0 %v1445_v21, %s3101_s18 }
 0x4a9   : > { %vm1687_vm7 = vcmp.ge.s32.totalorder %v1684_v34, %v1686_v57  ;;  %v3042_v34 = vld [vmem:[%s3230_s27 + $0x8] sm:$0xff]  }
 0x4f5   : > { %v1451_v24 = vpop.permute.xlu0 %1450  ;;  %v1489_v27 = vpop.permute.xlu1 %1488 }
 0x4f6   : > { %v1494_v29 = vadd.f32 %v1489_v27, %v1470_v23  ;;  %v1462_v30 = vadd.f32 %v1451_v24, %v1409_v28 }
 0x4f8   : > { %v1500_v31 = vpack.c.bf16 %v1494_v29, %v1494_v29  ;;  %v1466_v38 = vmul.f32 0.25, %v1462_v30 }
 0x4fa   : > { %v1509_v35 = vsel %vm1504_vm6, %v1500_v31, 0  ;;  %v1453_v36 = vpop.permute.xlu1 %1452  ;;  %v1496_v17 = vpack.c.bf16 %v1466_v38, %v1466_v38 }
 0x4fb   : > { %v1463_v37 = vadd.f32 %v1453_v36, %v1410_v32  ;;  %2866 = vmatpush3.bf16.xpose.msra.mxu0 %v1509_v35  ;;  %2872 = vmatpush3.bf16.xpose.msra.mxu1 %v1509_v35 }
 0x4fc   : > { %2877 = vmatprep.subr.bf16.mxu0 %v3097_v42  ;;  %2883 = vmatprep.subr.bf16.mxu1 %v3097_v42 }
 0x4fd   : > { %v1467_v26 = vmul.f32 0.25, %v1463_v37 }
 0x4ff   : > { %v1497_v39 = vpack.c.bf16 %v1467_v26, %v1467_v26 }
 0x502   : > { %2868 = vmatmul.mubr.msk.bf16.vlgmr.msra.gmra.mrb[12].mxu0 %vm1504_vm6, %v1496_v17  ;;  %2874 = vmatmul.mubr.msk.bf16.vlgmr.msra.gmra.mrb[20].mxu1 %vm1504_vm6, %v1497_v39 }
 0x503   : > { %2879 = vmatprep.mubr.msk.bf16.mxu0 %vm3098_vm3, %v3097_v42  ;;  %2885 = vmatprep.mubr.msk.bf16.mxu1 %vm3098_vm3, %v3097_v42 }
 0x512   : > { %v1491_v40 = vpop.permute.xlu0 %1490 }
 0x513   : > { %v1495_v43 = vadd.f32 %v1491_v40, %v1471_v25 }
 0x515   : > { %v1501_v44 = vpack.c.bf16 %v1495_v43, %v1495_v43 }
 0x516   : > { %v1455_v46 = vpop.permute.xlu1 %1454 }
 0x517   : > { %v1598_v47 = vsel %vm1504_vm6, %v1501_v44, 0  ;;  %v1464_v48 = vadd.f32 %v1455_v46, %v1411_v45 }
 0x518   : > { %2878 = vmatpush3.bf16.xpose.msra.mxu0 %v1598_v47  ;;  %2884 = vmatpush3.bf16.xpose.msra.mxu1 %v1598_v47 }
 0x519   : > { %v1468_v49 = vmul.f32 0.25, %v1464_v48  ;;  %2889 = vmatprep.subr.bf16.mxu0 %v3097_v42  ;;  %2895 = vmatprep.subr.bf16.mxu1 %v3097_v42 }
 0x51a   : > { %v1457_v52 = vpop.permute.xlu0 %1456 }
 0x51b   : > { %v1465_v53 = vadd.f32 %v1457_v52, %v1412_v51  ;;  %v1498_v54 = vpack.c.bf16 %v1468_v49, %v1468_v49 }
 0x51d   : > { %v1469_v18 = vmul.f32 0.25, %v1465_v53 }
 0x51f   : > { %v1499_v56 = vpack.c.bf16 %v1469_v18, %v1469_v18  ;;  %2880 = vmatmul.mubr.msk.bf16.vlgmr.msra.gmra.mrb[16].mxu0 %vm1504_vm6, %v1498_v54 }
 0x520   : > { %2890 = vmatpush3.bf16.msra.mxu0 %v1746_v55  ;;  %2891 = vmatprep.mubr.msk.bf16.mxu0 %vm3098_vm3, %v3097_v42 }
 0x521   : > { %2886 = vmatmul.mubr.msk.bf16.vlgmr.msra.gmra.mrb[24].mxu1 %vm1504_vm6, %v1499_v56  ;;  %2901 = vmatprep.subr.bf16.mxu0 %v3097_v42 }
 0x522   : > { %2896 = vmatpush3.bf16.msra.mxu1 %v1746_v55  ;;  %2897 = vmatprep.mubr.msk.bf16.mxu1 %vm3098_vm3, %v3097_v42 }
 0x523   : > { %2907 = vmatprep.subr.bf16.mxu1 %v3097_v42 }
 0x5d5   : > { %v1545_v58 = vpop.f32.mrb[12].mxu0  ;;  %v1588_v59 = vpop.f32.mrb[20].mxu1 }
 0x5d6   : > { %v1688_v60 = vsel %vm1687_vm7, %v1545_v58, -1e+30  ;;  %v1689_v61 = vsel %vm1687_vm7, %v1588_v59, -1e+30  ;;  %v2869_v62 = vpop.f32.mrb[13].mxu0  ;;  %v2875_v63 = vpop.f32.mrb[21].mxu1 }
 0x5d7   : > { %v1548_v0 = vpop.f32.mrb[14].mxu0  ;;  %v1591_v1 = vpop.f32.mrb[22].mxu1  ;;  %v1693_v2 = vsel %vm1692_vm8, %v1688_v60, -inf  ;;  %v1696_v3 = vsel %vm1692_vm8, %v1689_v61, -inf  ;;  %v3043_v58 = vld [vmem:[%s3230_s27 + $0x10] sm:$0xff]   ;;  %v3044_v62 = vld [vmem:[%s3230_s27 + $0x18] sm:$0xff]  }
 0x5d8   : > { %1694 = vmax.xlane.f32.xlu1 %v1693_v2  ;;  %v2870_v4 = vpop.f32.mrb[15].mxu0  ;;  %1697 = vmax.xlane.f32.xlu0 %v1696_v3  ;;  %v2876_v5 = vpop.f32.mrb[23].mxu1 }
 0x5f2   : > { %v1634_v6 = vpop.f32.mrb[16].mxu0 }
 0x5f3   : > { %v1690_v7 = vsel %vm1687_vm7, %v1634_v6, -1e+30  ;;  %v2881_v8 = vpop.f32.mrb[17].mxu0 }
 0x5f4   : > { %v1637_v9 = vpop.f32.mrb[18].mxu0  ;;  %v1677_v10 = vpop.f32.mrb[24].mxu1  ;;  %v1699_v11 = vsel %vm1692_vm8, %v1690_v7, -inf }
 0x5f5   : > { %v1691_v12 = vsel %vm1687_vm7, %v1677_v10, -1e+30  ;;  %v2882_v13 = vpop.f32.mrb[19].mxu0  ;;  %1700 = vmax.xlane.f32.xlu0 %v1699_v11  ;;  %v2887_v14 = vpop.f32.mrb[25].mxu1 }
 0x5f6   : > { %v1680_v15 = vpop.f32.mrb[26].mxu1  ;;  %v1702_v16 = vsel %vm1692_vm8, %v1691_v12, -inf }
 0x5f7   : > { %1703 = vmax.xlane.f32.xlu1 %v1702_v16  ;;  %v2888_v19 = vpop.f32.mrb[27].mxu1 }
 0x665   : > { %v1695_v20 = vpop.xlane.xlu1 %1694  ;;  %v1698_v21 = vpop.xlane.xlu0 %1697 }
 0x666   : > { %v1705_v22 = vsub.f32 %v1688_v60, %v1695_v20  ;;  %v1706_v23 = vsub.f32 %v1689_v61, %v1698_v21 }
 0x668   : > { %v1709_v24 = vmul.f32 1.442695, %v1705_v22  ;;  %v1711_v27 = vmul.f32 1.442695, %v1706_v23 }
 0x66a   : > { %3063 = vpow2.f32 %v1709_v24 }
 0x66b   : > { %3065 = vpow2.f32 %v1711_v27 }
 0x674   : > { %v3064_v28 = vpop.eup %3063 }
 0x675   : > { %v3066_v29 = vpop.eup %3065  ;;  %v1717_v30 = vsel %vm1692_vm8, %v3064_v28, 0.0 }
 0x676   : > { %1718 = vadd.xlane.f32.xlu0 %v1717_v30  ;;  %v1720_v31 = vsel %vm1692_vm8, %v3066_v29, 0.0 }
 0x677   : > { %1721 = vadd.xlane.f32.xlu1 %v1720_v31 }
 0x682   : > { %v1701_v32 = vpop.xlane.xlu0 %1700 }
 0x683   : > { %v1707_v35 = vsub.f32 %v1690_v7, %v1701_v32 }
 0x684   : > { %v1704_v36 = vpop.xlane.xlu1 %1703 }
 0x685   : > { %v1713_v37 = vmul.f32 1.442695, %v1707_v35  ;;  %v1708_v38 = vsub.f32 %v1691_v12, %v1704_v36 }
 0x687   : > { %3067 = vpow2.f32 %v1713_v37  ;;  %v1715_v26 = vmul.f32 1.442695, %v1708_v38 }
 0x689   : > { %3069 = vpow2.f32 %v1715_v26 }
 0x691   : > { %v3068_v39 = vpop.eup %3067 }
 0x692   : > { %v1723_v17 = vsel %vm1692_vm8, %v3068_v39, 0.0 }
 0x693   : > { %v3070_v25 = vpop.eup %3069  ;;  %1724 = vadd.xlane.f32.xlu0 %v1723_v17 }
 0x694   : > { %v1726_v40 = vsel %vm1692_vm8, %v3070_v25, 0.0 }
 0x695   : > { %1727 = vadd.xlane.f32.xlu1 %v1726_v40 }
 0x703   : > { %v1719_v43 = vpop.xlane.xlu0 %1718 }
 0x704   : > { %3071 = vrcp.f32 %v1719_v43  ;;  %v1722_v44 = vpop.xlane.xlu1 %1721 }
 0x705   : > { %3073 = vrcp.f32 %v1722_v44  ;;  %v3085_v44 = vld [vmem:[#allocation2] sm:$0xff] }
 0x70e   : > { %v3072_v45 = vpop.eup %3071 }
 0x70f   : > { %v3074_v46 = vpop.eup %3073  ;;  %v1730_v47 = vmul.f32 %v3072_v45, %v3064_v28 }
 0x710   : > { %v1732_v48 = vmul.f32 %v3074_v46, %v3066_v29 }
 0x711   : > { %v1737_v49 = vpack.c.bf16 %v1730_v47, %v1730_v47 }
 0x712   : > { %v1738_v51 = vpack.c.bf16 %v1732_v48, %v1732_v48  ;;  %v3045_v48 = vld [vmem:[%s3235_s17] sm:$0xff]  }
 0x713   : > { %2892 = vmatmul.mubr.msk.bf16.vlgmr.msra.gmra.mrb[20].mxu0 %vm1692_vm8, %v1737_v49  ;;  %v3046_v49 = vld [vmem:[%s3240_s21] sm:$0xff]  }
 0x714   : > { %2898 = vmatmul.mubr.msk.bf16.vlgmr.msra.gmra.mrb[28].mxu1 %vm1692_vm8, %v1738_v51  ;;  %2902 = vmatpush3.bf16.msra.mxu0 %v3425_v50  ;;  %v3047_v51 = vld [vmem:[%s3235_s17 + $0x8] sm:$0xff]  }
 0x715   : > { %2908 = vmatpush3.bf16.msra.mxu1 %v3425_v50  ;;  %2903 = vmatprep.mubr.msk.bf16.mxu0 %vm3098_vm3, %v3097_v42 }
 0x716   : > { %2909 = vmatprep.mubr.msk.bf16.mxu1 %vm3098_vm3, %v3097_v42  ;;  %2913 = vmatprep.subr.bf16.mxu0 %v3097_v42 }
 0x717   : > { %2919 = vmatprep.subr.bf16.mxu1 %v3097_v42 }
 0x720   : > { %v1725_v52 = vpop.xlane.xlu0 %1724 }
 0x721   : > { %3075 = vrcp.f32 %v1725_v52  ;;  %v3048_v52 = vld [vmem:[%s3240_s21 + $0x8] sm:$0xff]  }
 0x722   : > { %v1728_v41 = vpop.xlane.xlu1 %1727 }
 0x723   : > { %3077 = vrcp.f32 %v1728_v41  ;;  %v3049_v41 = vld [vmem:[%s3235_s17 + $0x10] sm:$0xff]  }
 0x72b   : > { %v3076_v53 = vpop.eup %3075 }
 0x72c   : > { %v1734_v54 = vmul.f32 %v3076_v53, %v3068_v39  ;;  %v3050_v53 = vld [vmem:[%s3240_s21 + $0x10] sm:$0xff]  }
 0x72d   : > { %v3078_v50 = vpop.eup %3077 }
 0x72e   : > { %v1736_v18 = vmul.f32 %v3078_v50, %v3070_v25  ;;  %v1739_v55 = vpack.c.bf16 %v1734_v54, %v1734_v54  ;;  %v3051_v54 = vld [vmem:[%s3235_s17 + $0x18] sm:$0xff]   ;;  %s3632_s17 = sld [smem:[#allocation10_spill]] (!%p2647_p5) }
 0x72f   : > { %v3052_v50 = vld [vmem:[%s3240_s21 + $0x18] sm:$0xff]  }
 0x730   : > { %v1740_v56 = vpack.c.bf16 %v1736_v18, %v1736_v18  ;;  %2904 = vmatmul.mubr.msk.bf16.vlgmr.msra.gmra.mrb[24].mxu0 %vm1692_vm8, %v1739_v55 }
 0x731   : > { %2915 = vmatprep.mubr.msk.bf16.mxu0 %vm3098_vm3, %v3097_v42  ;;  %2914 = vmatpush3.bf16.msra.mxu0 %v3041_v33 }
 0x732   : > { %2910 = vmatmul.mubr.msk.bf16.vlgmr.msra.gmra.mrb[32].mxu1 %vm1692_vm8, %v1740_v56  ;;  %2925 = vmatprep.subr.bf16.mxu0 %v3097_v42 }
 0x733   : > { %2921 = vmatprep.mubr.msk.bf16.mxu1 %vm3098_vm3, %v3097_v42  ;;  %2920 = vmatpush3.bf16.msra.mxu1 %v3042_v34  ;;  %v2627_v34 = vld [vmem:[%s639_s5] ss:$0 sm:$0xff] }
 0x734   : > { %2931 = vmatprep.subr.bf16.mxu1 %v3097_v42 }
 0x7e6   : > { %v1782_v57 = vpop.f32.mrb[20].mxu0 }
 0x7e7   : > { %v1920_v59 = vpack.c.bf16 %v1782_v57, %v1782_v57  ;;  %v1825_v60 = vpop.f32.mrb[28].mxu1  ;;  %v2893_v61 = vpop.f32.mrb[21].mxu0 }
 0x7e8   : > { %v1921_v63 = vpack.c.bf16 %v1825_v60, %v1825_v60  ;;  %v2899_v0 = vpop.f32.mrb[29].mxu1  ;;  %v1785_v1 = vpop.f32.mrb[22].mxu0  ;;  %v3053_v60 = vld [vmem:[%s3245_s16] sm:$0xff]   ;;  %v3054_v61 = vld [vmem:[%s3245_s16 + $0x8] sm:$0xff]  }
 0x7e9   : > { %v1828_v2 = vpop.f32.mrb[30].mxu1  ;;  %v2894_v3 = vpop.f32.mrb[23].mxu0  ;;  %2916 = vmatmul.mubr.msk.bf16.vlgmr.msra.gmra.mrb[28].mxu0 %vm1504_vm6, %v1920_v59  ;;  %v3057_v0 = vld [vmem:[%s3245_s16 + $0x20] sm:$0xff]   ;;  %v3058_v1 = vld [vmem:[%s3245_s16 + $0x28] sm:$0xff]  }
 0x7ea   : > { %v2900_v4 = vpop.f32.mrb[31].mxu1  ;;  %2922 = vmatmul.mubr.msk.bf16.vlgmr.msra.gmra.mrb[36].mxu1 %vm1504_vm6, %v1921_v63  ;;  %2926 = vmatpush3.bf16.msra.mxu0 %v3043_v58  ;;  %v3056_v63 = vld [vmem:[%s3245_s16 + $0x18] sm:$0xff]   ;;  %v3059_v2 = vld [vmem:[%s3245_s16 + $0x30] sm:$0xff]  }
 0x7eb   : > { %2932 = vmatpush3.bf16.msra.mxu1 %v3044_v62  ;;  %2927 = vmatprep.mubr.msk.bf16.mxu0 %vm3098_vm3, %v3097_v42  ;;  %v3055_v62 = vld [vmem:[%s3245_s16 + $0x10] sm:$0xff]   ;;  %v3060_v3 = vld [vmem:[%s3245_s16 + $0x38] sm:$0xff]  }
 0x7ec   : > { %2933 = vmatprep.mubr.msk.bf16.mxu1 %vm3098_vm3, %v3097_v42  ;;  %2937 = vmatprep.subr.bf16.mxu0 %v3097_v42 }
 0x7ed   : > { %2949 = vmatprep.subr.bf16.mxu1 %v3097_v42 }
 0x803   : > { %v1871_v5 = vpop.f32.mrb[24].mxu0 }
 0x804   : > { %v1922_v6 = vpack.c.bf16 %v1871_v5, %v1871_v5  ;;  %v2905_v7 = vpop.f32.mrb[25].mxu0 }
 0x805   : > { %v1874_v8 = vpop.f32.mrb[26].mxu0  ;;  %v1914_v9 = vpop.f32.mrb[32].mxu1 }
 0x806   : > { %v1923_v10 = vpack.c.bf16 %v1914_v9, %v1914_v9  ;;  %v2906_v11 = vpop.f32.mrb[27].mxu0  ;;  %v2911_v12 = vpop.f32.mrb[33].mxu1  ;;  %2928 = vmatmul.mubr.msk.bf16.vlgmr.msra.gmra.mrb[32].mxu0 %vm1504_vm6, %v1922_v6 }
 0x807   : > { %v1917_v13 = vpop.f32.mrb[34].mxu1  ;;  %2945 = vmatprep.mubr.msk.bf16.mxu0 %vm3098_vm3, %v3097_v42  ;;  %2938 = vmatpush3.bf16.msra.mxu0 %v3045_v48 }
 0x808   : > { %v2912_v14 = vpop.f32.mrb[35].mxu1  ;;  %2934 = vmatmul.mubr.msk.bf16.vlgmr.msra.gmra.mrb[40].mxu1 %vm1504_vm6, %v1923_v10  ;;  %2939 = vmatprep.subr.bf16.mxu0 %v3097_v42 }
 0x809   : > { %2957 = vmatprep.mubr.msk.bf16.mxu1 %vm3098_vm3, %v3097_v42  ;;  %2950 = vmatpush3.bf16.msra.mxu1 %v3046_v49 }
 0x80a   : > { %2951 = vmatprep.subr.bf16.mxu1 %v3097_v42 }
 0x80b   : > { %2940 = vmatpush3.bf16.msra.mxu0 %v3047_v51 }
 0x80c   : > { %2941 = vmatprep.subr.bf16.mxu0 %v3097_v42 }
 0x80d   : > { %2952 = vmatpush3.bf16.msra.mxu1 %v3048_v52 }
 0x80e   : > { %2953 = vmatprep.subr.bf16.mxu1 %v3097_v42 }
 0x80f   : > { %2942 = vmatpush3.bf16.msra.mxu0 %v3049_v41 }
 0x810   : > { %2943 = vmatprep.subr.bf16.mxu0 %v3097_v42 }
 0x811   : > { %2954 = vmatpush3.bf16.msra.mxu1 %v3050_v53 }
 0x812   : > { %2955 = vmatprep.subr.bf16.mxu1 %v3097_v42 }
 0x813   : > { %2944 = vmatpush3.bf16.msra.mxu0 %v3051_v54 }
 0x814   : > { %2961 = vmatprep.subr.bf16.mxu0 %v3097_v42 }
 0x815   : > { %2956 = vmatpush3.bf16.msra.mxu1 %v3052_v50 }
 0x8bc   : > { %v1975_v15 = vpop.f32.mrb[28].mxu0 }
 0x8bd   : > { %v2128_v16 = vsel %vm813_vm2, %v1975_v15, 0.0  ;;  %v2024_v19 = vpop.f32.mrb[36].mxu1  ;;  %v2917_v20 = vpop.f32.mrb[29].mxu0 }
 0x8be   : > { %v2129_v21 = vsel %vm813_vm2, %v2024_v19, 0.0  ;;  %v2923_v22 = vpop.f32.mrb[37].mxu1  ;;  %v1978_v23 = vpop.f32.mrb[30].mxu0 }
 0x8bf   : > { %v2130_v24 = vadd.f32 %v2129_v21, %v2128_v16  ;;  %v2027_v27 = vpop.f32.mrb[38].mxu1  ;;  %v2918_v28 = vpop.f32.mrb[31].mxu0 }
 0x8c0   : > { %v2924_v29 = vpop.f32.mrb[39].mxu1 }
 0x8d9   : > { %v2073_v30 = vpop.f32.mrb[32].mxu0 }
 0x8da   : > { %v2131_v31 = vsel %vm813_vm2, %v2073_v30, 0.0  ;;  %v2929_v32 = vpop.f32.mrb[33].mxu0 }
 0x8db   : > { %v2132_v35 = vadd.f32 %v2131_v31, %v2130_v24  ;;  %v2076_v36 = vpop.f32.mrb[34].mxu0  ;;  %v2122_v37 = vpop.f32.mrb[40].mxu1 }
 0x8dc   : > { %v2133_v38 = vsel %vm813_vm2, %v2122_v37, 0.0  ;;  %v2930_v26 = vpop.f32.mrb[35].mxu0  ;;  %v2935_v39 = vpop.f32.mrb[41].mxu1 }
 0x8dd   : > { %v2134_v17 = vadd.f32 %v2133_v38, %v2132_v35  ;;  %v2125_v25 = vpop.f32.mrb[42].mxu1 }
 0x8de   : > { %v2936_v40 = vpop.f32.mrb[43].mxu1 }
 0x8df   : > { %v2135_v43 = vmul.f32 0.7, %v2134_v17 }
 0x8e1   : > { %v3544_v45 = vadd.f32 %v3085_v44, %v2135_v43 }
 0x8e3   : > { %v2138_v46 = vmul.f32 %v3544_v45, %v3544_v45 }
 0x8e5   : > { %v2139_v47 = vsel %vm813_vm2, %v2138_v46, 0.0 }
 0x8e6   : > { %2140 = vadd.xlane.f32.xlu0 %v2139_v47 }
 0x973   : > { %v2141_v18 = vpop.xlane.xlu0 %2140 }
 0x974   : > { %v2142_v55 = vmul.f32 0.015625, %v2141_v18 }
 0x976   : > { %v2143_v56 = vadd.f32 1e-06, %v2142_v55 }
 0x978   : > { %3079 = vrsqrt.f32 %v2143_v56 }
 0x982   : > { %v3080_v33 = vpop.eup %3079 }
 0x983   : > { %v2145_v57 = vmul.f32 %v3080_v33, %v3544_v45 }
 0x985   : > { %v2152_v58 = vmul.f32 %v2627_v34, %v2145_v57 }
 0x987   : > { %v2153_v59 = vpack.c.bf16 %v2152_v58, %v2152_v58 }
 0x989   : > { %2946 = vmatmul.mubr.msk.bf16.vlgmr.msra.gmra.mrb[36].mxu0 %vm813_vm2, %v2153_v59  ;;  %2958 = vmatmul.mubr.msk.bf16.vlgmr.msra.gmra.mrb[44].mxu1 %vm813_vm2, %v2153_v59 }
 0x98a   : > { %2977 = vmatprep.mubr.msk.bf16.mxu0 %vm3098_vm3, %v3097_v42  ;;  %2962 = vmatpush3.bf16.msra.mxu0 %v3053_v60 }
 0x98b   : > { %2963 = vmatprep.subr.bf16.mxu0 %v3097_v42 }
 0x98e   : > { %2964 = vmatpush3.bf16.msra.mxu0 %v3054_v61 }
 0x98f   : > { %2965 = vmatprep.subr.bf16.mxu0 %v3097_v42 }
 0x992   : > { %2966 = vmatpush3.bf16.msra.mxu0 %v3055_v62 }
 0x993   : > { %2967 = vmatprep.subr.bf16.mxu0 %v3097_v42 }
 0x996   : > { %2968 = vmatpush3.bf16.msra.mxu0 %v3056_v63 }
 0x997   : > { %2969 = vmatprep.subr.bf16.mxu0 %v3097_v42 }
 0x99a   : > { %2970 = vmatpush3.bf16.msra.mxu0 %v3057_v0 }
 0x99b   : > { %2971 = vmatprep.subr.bf16.mxu0 %v3097_v42 }
 0x99e   : > { %2972 = vmatpush3.bf16.msra.mxu0 %v3058_v1 }
 0x99f   : > { %2973 = vmatprep.subr.bf16.mxu0 %v3097_v42 }
 0x9a2   : > { %2974 = vmatpush3.bf16.msra.mxu0 %v3059_v2 }
 0x9a3   : > { %2975 = vmatprep.subr.bf16.mxu0 %v3097_v42 }
 0x9a6   : > { %2976 = vmatpush3.bf16.msra.mxu0 %v3060_v3 }
 0xa5c   : > { %v2223_v4 = vpop.f32.mrb[36].mxu0  ;;  %v2295_v5 = vpop.f32.mrb[44].mxu1 }
 0xa5d   : > { %v2638_v6 = vmul.f32 -1.442695, %v2223_v4  ;;  %v2947_v7 = vpop.f32.mrb[37].mxu0  ;;  %v2959_v8 = vpop.f32.mrb[45].mxu1 }
 0xa5e   : > { %v2226_v9 = vpop.f32.mrb[38].mxu0  ;;  %v2298_v10 = vpop.f32.mrb[46].mxu1 }
 0xa5f   : > { %3081 = vpow2.f32 %v2638_v6  ;;  %v2948_v11 = vpop.f32.mrb[39].mxu0  ;;  %v2960_v12 = vpop.f32.mrb[47].mxu1 }
 0xa69   : > { %v3082_v13 = vpop.eup %3081 }
 0xa6a   : > { %v2304_v14 = vadd.f32 1.0, %v3082_v13 }
 0xa6c   : > { %3083 = vrcp.f32 %v2304_v14 }
 0xa76   : > { %v3084_v15 = vpop.eup %3083 }
 0xa77   : > { %v2307_v16 = vmul.f32 %v3084_v15, %v2223_v4 }
 0xa79   : > { %v2308_v19 = vmul.f32 %v2307_v16, %v2295_v5 }
 0xa7b   : > { %v2309_v20 = vpack.c.bf16 %v2308_v19, %v2308_v19 }
 0xa7d   : > { %2978 = vmatmul.mubr.bf16.vlgmr.msra.gmra.mrb[40].mxu0 %v2309_v20 }
 0xb4f   : > { %2420 = sbr.rel (%p2647_p5) target bundleno = 2904 (0xb58), region = 92 }
 0xb50   : > { %v2408_v42 = vpop.f32.mrb[40].mxu0 }
 0xb51   : > { %v2414_v21 = vmul.f32 0.7, %v2408_v42  ;;  %v2979_v22 = vpop.f32.mrb[41].mxu0 }
 0xb52   : > { %v2411_v23 = vpop.f32.mrb[42].mxu0 }
 0xb53   : > { %v2415_v24 = vadd.f32 %v2414_v21, %v3544_v45  ;;  %v2980_v27 = vpop.f32.mrb[43].mxu0 }
 0xb55   : > { %2416 = vst.msk [vmem:[#allocation2] sm:$0xff] %vm813_vm2, %v2415_v24  ;;  %v2421_v28 = vmul.f32 (!%p2647_p5), 0.5, %v2415_v24 }
 0xb57   : > { %2422 = vst.msk [vmem:[%s3632_s17] sm:$0xff] %vm813_vm2, %v2421_v28 }
 0xb58 PF: > { %s3633_s21 = sld [smem:[#allocation3_spill]] }
 0xb5e   : > { %s26_s21 = sadd.s32 1, %s3633_s21  }
 0xb5f   : > { %p23_p6 = scmp.ge.s32.totalorder %s26_s21, 4  }
 0xb61   :  { %25 = sbr.rel (!%p23_p6) target bundleno = 8 (0x8), region = 142 }

</bundles_post_ra>
